<compile_context>
chip_gen: v7x
topology: tpu7x:2x2x1
jax: 0.10.0
libtpu: 0.0.40
codegen_flags: <defaults>
</compile_context>

<pallas_src>
import functools

import jax
import jax.numpy as jnp
from jax.experimental import pallas as pl
from jax.experimental.pallas import tpu as pltpu


_GROUPS = (((0,), (1, 2)), ((0, 1), (2,)))  # SA[a][r] -> contributing 3x3 taps


def _decoder_kernel(x_ref, top_ref, bot_ref, w_ref, b_ref, o_ref, xw_ref, *,
                    tile_h, W, C_in, C_out, use_bf16):
    """One (batch, row-tile) grid step.

    x_ref  : (1, tile_h, W, C_in)        body rows of the UNPADDED input
    top_ref: (1, 1, W, C_in)             row above the tile (clamped at t==0)
    bot_ref: (1, 1, W, C_in)             row below the tile (clamped at t==T-1)
    w_ref  : (4, 4*C_in, C_out)          K-concatenated phase weights, p = 2a+b
    b_ref  : (1, C_out)
    o_ref  : (1, tile_h, 2, W, 2*C_out)  lane-dense output; NHWC is a free reshape
    xw_ref : (tile_h+2, W+2, C_in)       VMEM scratch: zero-padded window
    """
    t = pl.program_id(1)
    num_t = pl.num_programs(1)
    f32 = jnp.float32

    # ---- assemble the zero-padded window in VMEM (in-kernel padding) ----
    xw_ref[1:tile_h + 1, 1:W + 1, :] = x_ref[0].astype(f32)
    xw_ref[0:1, 1:W + 1, :] = top_ref[0].astype(f32)
    xw_ref[tile_h + 1:tile_h + 2, 1:W + 1, :] = bot_ref[0].astype(f32)

    zero_row = jnp.zeros((1, W, C_in), f32)

    @pl.when(t == 0)
    def _():  # top image boundary
        xw_ref[0:1, 1:W + 1, :] = zero_row

    @pl.when(t == num_t - 1)
    def _():  # bottom image boundary
        xw_ref[tile_h + 1:tile_h + 2, 1:W + 1, :] = zero_row

    zero_col = jnp.zeros((tile_h + 2, 1, C_in), f32)
    xw_ref[:, 0:1, :] = zero_col
    xw_ref[:, W + 1:W + 2, :] = zero_col

    # ---- phase-decomposed conv: 4 matmuls, K = 4*C_in, N = C_out ----
    MH = tile_h * W
    RW = (tile_h + 2) * W
    cdt = jnp.bfloat16 if use_bf16 else f32

    # Three column-shifted, width-aligned slabs of the padded window.
    xs = [xw_ref[:, c:c + W, :].reshape(RW, C_in) for c in range(3)]
    # The 9 distinct (row-offset d, col-offset c) patches of the ORIGINAL image.
    pat = [[xs[c][d * W:d * W + MH] for c in range(3)] for d in range(3)]

    bias = b_ref[...].astype(f32)                        # (1, C_out), hoisted

    for a in range(2):
        ys = []
        for b in range(2):
            # K-concatenated patch slab -> one MXU call per output phase.
            slab = jnp.concatenate(
                [pat[a][b], pat[a][b + 1], pat[a + 1][b], pat[a + 1][b + 1]],
                axis=-1).astype(cdt)                     # (MH, 4*C_in)
            wk = w_ref[a * 2 + b].astype(cdt)            # (4*C_in, C_out)
            y = jnp.dot(slab, wk, preferred_element_type=f32) + bias
            ys.append(jnp.maximum(y, 0.0))
        # Lane-concat the two column phases -> dense (MH, 2*C_out) store.
        ya = jnp.concatenate(ys, axis=-1)                # (MH, 2*C_out)
        o_ref[0, :, a:a + 1] = ya.reshape(tile_h, 1, W, 2 * C_out).astype(o_ref.dtype)


def _phase_weights(weight_oihw):
    """(C_out, C_in, 3, 3) -> (4, 4*C_in, C_out); phase p = 2a+b, K block j = 2r+s."""
    w3 = jnp.transpose(weight_oihw, (2, 3, 1, 0))        # (kh, kw, C_in, C_out)
    phases = []
    for a in range(2):
        for b in range(2):
            kblocks = []
            for r in range(2):
                for s in range(2):
                    w_sum = None
                    for kh in _GROUPS[a][r]:
                        for kw in _GROUPS[b][s]:
                            w_sum = w3[kh, kw] if w_sum is None else w_sum + w3[kh, kw]
                    kblocks.append(w_sum)
            phases.append(jnp.concatenate(kblocks, axis=0))   # (4*C_in, C_out)
    return jnp.stack(phases, axis=0)                          # (4, 4*C_in, C_out)


def _vmem_limit_bytes():
    """Generation-aware per-core VMEM limit (~3/4 of capacity, capped at 96 MiB)."""
    cap = 64 * 1024 * 1024          # conservative default (v7x per-TensorCore)
    try:
        info_cap = int(pltpu.get_tpu_info().vmem_capacity_bytes)
        if info_cap > 0:
            cap = info_cap
    except Exception:
        pass
    return min((cap * 3) // 4, 96 * 1024 * 1024)


def _step_bytes(tile_h, W, C_in, C_out):
    it = 4
    x_blk = tile_h * W * C_in * it
    halo = 2 * W * C_in * it
    out_blk = 4 * tile_h * W * C_out * it
    wgt = (16 * C_in * C_out + C_out) * it
    scratch = (tile_h + 2) * (W + 2) * C_in * it
    temps = (3 * (tile_h + 2) * W * C_in          # column-shifted slabs
             + 2 * tile_h * W * 4 * C_in          # K-concat slabs in flight
             + 3 * tile_h * W * C_out) * it       # phase results
    return 2 * (x_blk + halo + out_blk) + 2 * wgt + scratch + temps


def _pick_tile_h(N, H, W, C_in, C_out, budget_bytes):
    """Largest row tile dividing H whose working set fits the budget."""
    best = 1   # degenerate fallback (tiny MXU M dim) only for extreme W*C_in
    for th in range(1, H + 1):
        if H % th == 0 and _step_bytes(th, W, C_in, C_out) <= budget_bytes:
            best = th
    if N == 1 and best == H and H > 1:
        # Keep >= 2 grid steps so both v7x TensorCores (megacore) get work.
        for th in range(H // 2, 0, -1):
            if H % th == 0:
                best = th
                break
    return best


def _decoder_core(x_nhwc, weight_oihw, bias, tile_h=None, use_bf16=False):
    """Returns (N, H, 2, W, 2*C_out); out[n,h,a,w,b*C_out+c] = y[n,2h+a,2w+b,c]."""
    N, H, W, C_in = x_nhwc.shape
    C_out = weight_oihw.shape[0]

    vmem_limit = _vmem_limit_bytes()
    if tile_h is None:
        tile_h = _pick_tile_h(N, H, W, C_in, C_out, budget_bytes=vmem_limit // 2)
    assert H % tile_h == 0, "tile_h must divide H"
    T = H // tile_h

    wk = _phase_weights(weight_oihw).astype(jnp.float32)     # (4, 4*C_in, C_out)
    b2 = bias.reshape(1, C_out).astype(jnp.float32)

    kernel = functools.partial(_decoder_kernel, tile_h=tile_h, W=W,
                               C_in=C_in, C_out=C_out, use_bf16=use_bf16)

    out = pl.pallas_call(
        kernel,
        out_shape=jax.ShapeDtypeStruct((N, H, 2, W, 2 * C_out), jnp.float32),
        grid_spec=pltpu.PrefetchScalarGridSpec(
            num_scalar_prefetch=0,
            grid=(N, T),
            in_specs=[
                pl.BlockSpec((1, tile_h, W, C_in), lambda n, t: (n, t, 0, 0)),
                # Row-block size 1 => index_map returns the (clamped) row index.
                pl.BlockSpec((1, 1, W, C_in),
                             lambda n, t: (n, jnp.maximum(t * tile_h - 1, 0), 0, 0)),
                pl.BlockSpec((1, 1, W, C_in),
                             lambda n, t: (n, jnp.minimum((t + 1) * tile_h, H - 1), 0, 0)),
                pl.BlockSpec((4, 4 * C_in, C_out), lambda n, t: (0, 0, 0)),
                pl.BlockSpec((1, C_out), lambda n, t: (0, 0)),
            ],
            out_specs=pl.BlockSpec((1, tile_h, 2, W, 2 * C_out),
                                   lambda n, t: (n, t, 0, 0, 0)),
            scratch_shapes=[pltpu.VMEM((tile_h + 2, W + 2, C_in), jnp.float32)],
        ),
        compiler_params=pltpu.CompilerParams(
            dimension_semantics=("parallel", "parallel"),
            vmem_limit_bytes=vmem_limit,
        ),
    )(x_nhwc, x_nhwc, x_nhwc, wk, b2)
    return out


def unet_decoder_block_nhwc(x_nhwc, weight_oihw, bias, tile_h=None, use_bf16=False):
    """NHWC entry: (N, H, W, C_in) -> (N, 2H, 2W, C_out).  No epilogue transpose."""
    N, H, W, _ = x_nhwc.shape
    C_out = weight_oihw.shape[0]
    out = _decoder_core(x_nhwc, weight_oihw, bias, tile_h, use_bf16)
    return out.reshape(N, 2 * H, 2 * W, C_out)               # pure metadata reshape


def unet_decoder_block(x_nchw, weight_oihw, bias, tile_h=None, use_bf16=False):
    """PyTorch-compatible forward: (N, C_in, H, W) -> (N, C_out, 2H, 2W)."""
    x_nhwc = jnp.transpose(x_nchw, (0, 2, 3, 1))
    y = unet_decoder_block_nhwc(x_nhwc, weight_oihw, bias, tile_h, use_bf16)
    return jnp.transpose(y, (0, 3, 1, 2))


def _reference(x_nchw, weight_oihw, bias):
    """Pure-JAX reference (upsample x2 nearest -> lax conv -> ReLU)."""
    x = jnp.repeat(jnp.repeat(x_nchw, 2, axis=2), 2, axis=3)
    y = jax.lax.conv_general_dilated(
        x, weight_oihw, window_strides=(1, 1), padding=((1, 1), (1, 1)),
        dimension_numbers=("NCHW", "OIHW", "NCHW"))
    return jnp.maximum(y + bias.reshape(1, -1, 1, 1), 0.0)


if __name__ == "__main__":
    key = jax.random.PRNGKey(0)
    k_x, k_w, k_b = jax.random.split(key, 3)

    N, C_in, C_out, H, W = 2, 4, 8, 16, 16

    x = jax.random.normal(k_x, (N, C_in, H, W), dtype=jnp.float32)
    fan_in = C_in * 3 * 3
    weight = jax.random.normal(k_w, (C_out, C_in, 3, 3), dtype=jnp.float32) / jnp.sqrt(fan_in)
    bias = jax.random.normal(k_b, (C_out,), dtype=jnp.float32) * 0.01

    ref = jax.block_until_ready(_reference(x, weight, bias))

    # Multi-row-tile path (exercises halo rows + boundary zeroing): grid (N, 2).
    out_tiled = jax.block_until_ready(unet_decoder_block(x, weight, bias, tile_h=8))
    # Auto-picked tile (whole image per step here).
    out_auto = jax.block_until_ready(unet_decoder_block(x, weight, bias))
    # NHWC entry point (zero layout transposes), 4 row tiles.
    out_nhwc = jax.block_until_ready(
        unet_decoder_block_nhwc(jnp.transpose(x, (0, 2, 3, 1)), weight, bias, tile_h=4))
    # bf16 matmul operands, f32 accumulation.
    out_bf16 = jax.block_until_ready(
        unet_decoder_block(x, weight, bias, tile_h=8, use_bf16=True))

    assert out_tiled.shape == (N, C_out, 2 * H, 2 * W), out_tiled.shape
    assert jnp.allclose(out_tiled, ref, atol=2e-5, rtol=2e-5), "tiled mismatch vs reference"
    assert jnp.allclose(out_auto, ref, atol=2e-5, rtol=2e-5), "auto-tile mismatch vs reference"
    assert jnp.allclose(jnp.transpose(out_nhwc, (0, 3, 1, 2)), ref,
                        atol=2e-5, rtol=2e-5), "nhwc mismatch vs reference"
    assert jnp.allclose(out_bf16, ref, atol=5e-2, rtol=5e-2), "bf16 mismatch vs reference"

    print("KERNEL_OK")
</pallas_src>

<mosaic_0001>
module attributes {stable_mosaic.version = 11 : i64} {
  func.func @_decoder_kernel(%arg0: i32, %arg1: i32, %arg2: memref<1x8x16x4xf32, #tpu.memory_space<vmem>>, %arg3: memref<1x1x16x4xf32, #tpu.memory_space<vmem>>, %arg4: memref<1x1x16x4xf32, #tpu.memory_space<vmem>>, %arg5: memref<4x16x8xf32, #tpu.memory_space<vmem>>, %arg6: memref<1x8xf32, #tpu.memory_space<vmem>>, %arg7: memref<1x8x2x16x16xf32, #tpu.memory_space<vmem>>, %arg8: memref<10x18x4xf32, #tpu.memory_space<vmem>>) attributes {dimension_semantics = [#tpu.dimension_semantics<parallel>, #tpu.dimension_semantics<parallel>], iteration_bounds = array<i64: 2, 2>, scalar_prefetch = 0 : i64, scratch_operands = 1 : i64, tpu.core_type = #tpu.core_type<tc>, window_params = [{transform_indices = @transform_0, window_bounds = array<i64: 1, 8, 16, 4>}, {transform_indices = @transform_1, window_bounds = array<i64: 1, 1, 16, 4>}, {transform_indices = @transform_2, window_bounds = array<i64: 1, 1, 16, 4>}, {pipeline_mode = #tpu.pipeline_mode<synchronous>, transform_indices = @transform_3, window_bounds = array<i64: 4, 16, 8>}, {pipeline_mode = #tpu.pipeline_mode<synchronous>, transform_indices = @transform_4, window_bounds = array<i64: 1, 8>}, {transform_indices = @transform_5, window_bounds = array<i64: 1, 8, 2, 16, 16>}]} {
    %c0 = arith.constant 0 : index
    %c0_0 = arith.constant 0 : index
    %c0_1 = arith.constant 0 : index
    %c0_2 = arith.constant 0 : index
    %0 = vector.load %arg2[%c0, %c0_0, %c0_1, %c0_2] : memref<1x8x16x4xf32, #tpu.memory_space<vmem>>, vector<1x8x16x4xf32>
    %1 = vector.shape_cast %0 : vector<1x8x16x4xf32> to vector<8x16x4xf32>
    %c1 = arith.constant 1 : index
    %c1_3 = arith.constant 1 : index
    %c0_4 = arith.constant 0 : index
    %2 = vector.load %arg8[%c1, %c1_3, %c0_4] : memref<10x18x4xf32, #tpu.memory_space<vmem>>, vector<8x16x4xf32>
    tpu.vector_store %arg8[%c1, %c1_3, %c0_4], %1 {strides = array<i32>} : memref<10x18x4xf32, #tpu.memory_space<vmem>>, vector<8x16x4xf32>,
    %c0_5 = arith.constant 0 : index
    %c0_6 = arith.constant 0 : index
    %c0_7 = arith.constant 0 : index
    %c0_8 = arith.constant 0 : index
    %3 = vector.load %arg3[%c0_5, %c0_6, %c0_7, %c0_8] : memref<1x1x16x4xf32, #tpu.memory_space<vmem>>, vector<1x1x16x4xf32>
    %4 = vector.shape_cast %3 : vector<1x1x16x4xf32> to vector<1x16x4xf32>
    %c0_9 = arith.constant 0 : index
    %c1_10 = arith.constant 1 : index
    %c0_11 = arith.constant 0 : index
    %5 = vector.load %arg8[%c0_9, %c1_10, %c0_11] : memref<10x18x4xf32, #tpu.memory_space<vmem>>, vector<1x16x4xf32>
    tpu.vector_store %arg8[%c0_9, %c1_10, %c0_11], %4 {strides = array<i32>} : memref<10x18x4xf32, #tpu.memory_space<vmem>>, vector<1x16x4xf32>,
    %c0_12 = arith.constant 0 : index
    %c0_13 = arith.constant 0 : index
    %c0_14 = arith.constant 0 : index
    %c0_15 = arith.constant 0 : index
    %6 = vector.load %arg4[%c0_12, %c0_13, %c0_14, %c0_15] : memref<1x1x16x4xf32, #tpu.memory_space<vmem>>, vector<1x1x16x4xf32>
    %7 = vector.shape_cast %6 : vector<1x1x16x4xf32> to vector<1x16x4xf32>
    %c9 = arith.constant 9 : index
    %c1_16 = arith.constant 1 : index
    %c0_17 = arith.constant 0 : index
    %8 = vector.load %arg8[%c9, %c1_16, %c0_17] : memref<10x18x4xf32, #tpu.memory_space<vmem>>, vector<1x16x4xf32>
    tpu.vector_store %arg8[%c9, %c1_16, %c0_17], %7 {strides = array<i32>} : memref<10x18x4xf32, #tpu.memory_space<vmem>>, vector<1x16x4xf32>,
    %cst = arith.constant 0.000000e+00 : f32
    %9 = vector.broadcast %cst : f32 to vector<1x16x4xf32>
    %c0_i32 = arith.constant 0 : i32
    %10 = arith.cmpi eq, %arg1, %c0_i32 : i32
    %11 = arith.extui %10 : i1 to i32
    %c0_i32_18 = arith.constant 0 : i32
    %12 = arith.cmpi ne, %11, %c0_i32_18 : i32
    scf.if %12 {
      %c0_65 = arith.constant 0 : index
      %c1_66 = arith.constant 1 : index
      %c0_67 = arith.constant 0 : index
      %77 = vector.load %arg8[%c0_65, %c1_66, %c0_67] : memref<10x18x4xf32, #tpu.memory_space<vmem>>, vector<1x16x4xf32>
      tpu.vector_store %arg8[%c0_65, %c1_66, %c0_67], %9 {strides = array<i32>} : memref<10x18x4xf32, #tpu.memory_space<vmem>>, vector<1x16x4xf32>,
    } else {
    }
    %c1_i32 = arith.constant 1 : i32
    %13 = arith.cmpi eq, %arg1, %c1_i32 : i32
    %14 = arith.extui %13 : i1 to i32
    %c0_i32_19 = arith.constant 0 : i32
    %15 = arith.cmpi ne, %14, %c0_i32_19 : i32
    scf.if %15 {
      %c9_65 = arith.constant 9 : index
      %c1_66 = arith.constant 1 : index
      %c0_67 = arith.constant 0 : index
      %77 = vector.load %arg8[%c9_65, %c1_66, %c0_67] : memref<10x18x4xf32, #tpu.memory_space<vmem>>, vector<1x16x4xf32>
      tpu.vector_store %arg8[%c9_65, %c1_66, %c0_67], %9 {strides = array<i32>} : memref<10x18x4xf32, #tpu.memory_space<vmem>>, vector<1x16x4xf32>,
    } else {
    }
    %cst_20 = arith.constant 0.000000e+00 : f32
    %16 = vector.broadcast %cst_20 : f32 to vector<10x1x4xf32>
    %c0_21 = arith.constant 0 : index
    %c0_22 = arith.constant 0 : index
    %c0_23 = arith.constant 0 : index
    %17 = vector.load %arg8[%c0_21, %c0_22, %c0_23] : memref<10x18x4xf32, #tpu.memory_space<vmem>>, vector<10x1x4xf32>
    tpu.vector_store %arg8[%c0_21, %c0_22, %c0_23], %16 {strides = array<i32>} : memref<10x18x4xf32, #tpu.memory_space<vmem>>, vector<10x1x4xf32>,
    %c0_24 = arith.constant 0 : index
    %c17 = arith.constant 17 : index
    %c0_25 = arith.constant 0 : index
    %18 = vector.load %arg8[%c0_24, %c17, %c0_25] : memref<10x18x4xf32, #tpu.memory_space<vmem>>, vector<10x1x4xf32>
    tpu.vector_store %arg8[%c0_24, %c17, %c0_25], %16 {strides = array<i32>} : memref<10x18x4xf32, #tpu.memory_space<vmem>>, vector<10x1x4xf32>,
    %c0_26 = arith.constant 0 : index
    %c0_27 = arith.constant 0 : index
    %c0_28 = arith.constant 0 : index
    %19 = vector.load %arg8[%c0_26, %c0_27, %c0_28] : memref<10x18x4xf32, #tpu.memory_space<vmem>>, vector<10x16x4xf32>
    %20 = vector.shape_cast %19 : vector<10x16x4xf32> to vector<160x4xf32>
    %c0_29 = arith.constant 0 : index
    %c1_30 = arith.constant 1 : index
    %c0_31 = arith.constant 0 : index
    %21 = vector.load %arg8[%c0_29, %c1_30, %c0_31] : memref<10x18x4xf32, #tpu.memory_space<vmem>>, vector<10x16x4xf32>
    %22 = vector.shape_cast %21 : vector<10x16x4xf32> to vector<160x4xf32>
    %c0_32 = arith.constant 0 : index
    %c2 = arith.constant 2 : index
    %c0_33 = arith.constant 0 : index
    %23 = vector.load %arg8[%c0_32, %c2, %c0_33] : memref<10x18x4xf32, #tpu.memory_space<vmem>>, vector<10x16x4xf32>
    %24 = vector.shape_cast %23 : vector<10x16x4xf32> to vector<160x4xf32>
    %25 = vector.extract_strided_slice %20 {offsets = [0, 0], sizes = [128, 4], strides = [1, 1]} : vector<160x4xf32> to vector<128x4xf32>
    %26 = vector.extract_strided_slice %22 {offsets = [0, 0], sizes = [128, 4], strides = [1, 1]} : vector<160x4xf32> to vector<128x4xf32>
    %27 = vector.extract_strided_slice %24 {offsets = [0, 0], sizes = [128, 4], strides = [1, 1]} : vector<160x4xf32> to vector<128x4xf32>
    %28 = vector.extract_strided_slice %20 {offsets = [16, 0], sizes = [128, 4], strides = [1, 1]} : vector<160x4xf32> to vector<128x4xf32>
    %29 = vector.extract_strided_slice %22 {offsets = [16, 0], sizes = [128, 4], strides = [1, 1]} : vector<160x4xf32> to vector<128x4xf32>
    %30 = vector.extract_strided_slice %24 {offsets = [16, 0], sizes = [128, 4], strides = [1, 1]} : vector<160x4xf32> to vector<128x4xf32>
    %31 = vector.extract_strided_slice %20 {offsets = [32, 0], sizes = [128, 4], strides = [1, 1]} : vector<160x4xf32> to vector<128x4xf32>
    %32 = vector.extract_strided_slice %22 {offsets = [32, 0], sizes = [128, 4], strides = [1, 1]} : vector<160x4xf32> to vector<128x4xf32>
    %33 = vector.extract_strided_slice %24 {offsets = [32, 0], sizes = [128, 4], strides = [1, 1]} : vector<160x4xf32> to vector<128x4xf32>
    %c0_34 = arith.constant 0 : index
    %c0_35 = arith.constant 0 : index
    %34 = vector.load %arg6[%c0_34, %c0_35] : memref<1x8xf32, #tpu.memory_space<vmem>>, vector<1x8xf32>
    %35 = tpu.concatenate %25, %26, %28, %29 in 1 : vector<128x4xf32>, vector<128x4xf32>, vector<128x4xf32>, vector<128x4xf32> -> vector<128x16xf32>
    %c0_36 = arith.constant 0 : index
    %c0_37 = arith.constant 0 : index
    %c0_38 = arith.constant 0 : index
    %36 = vector.load %arg5[%c0_36, %c0_37, %c0_38] : memref<4x16x8xf32, #tpu.memory_space<vmem>>, vector<1x16x8xf32>
    %37 = vector.shape_cast %36 : vector<1x16x8xf32> to vector<16x8xf32>
    %cst_39 = arith.constant dense<0.000000e+00> : vector<128x8xf32>
    %38 = tpu.matmul %35, %37, %cst_39 {dimension_numbers = #tpu.dot_dimension_numbers<[1], [0], [0], [1], [0, 0, 1, 1], [], []>} : vector<128x16xf32>, vector<16x8xf32>, vector<128x8xf32> -> vector<128x8xf32>
    %39 = vector.broadcast %34 : vector<1x8xf32> to vector<128x8xf32>
    %40 = arith.addf %38, %39 : vector<128x8xf32>
    %cst_40 = arith.constant 0.000000e+00 : f32
    %41 = vector.broadcast %cst_40 : f32 to vector<128x8xf32>
    %42 = arith.maximumf %40, %41 : vector<128x8xf32>
    %43 = tpu.concatenate %26, %27, %29, %30 in 1 : vector<128x4xf32>, vector<128x4xf32>, vector<128x4xf32>, vector<128x4xf32> -> vector<128x16xf32>
    %c1_41 = arith.constant 1 : index
    %c0_42 = arith.constant 0 : index
    %c0_43 = arith.constant 0 : index
    %44 = vector.load %arg5[%c1_41, %c0_42, %c0_43] : memref<4x16x8xf32, #tpu.memory_space<vmem>>, vector<1x16x8xf32>
    %45 = vector.shape_cast %44 : vector<1x16x8xf32> to vector<16x8xf32>
    %cst_44 = arith.constant dense<0.000000e+00> : vector<128x8xf32>
    %46 = tpu.matmul %43, %45, %cst_44 {dimension_numbers = #tpu.dot_dimension_numbers<[1], [0], [0], [1], [0, 0, 1, 1], [], []>} : vector<128x16xf32>, vector<16x8xf32>, vector<128x8xf32> -> vector<128x8xf32>
    %47 = vector.broadcast %34 : vector<1x8xf32> to vector<128x8xf32>
    %48 = arith.addf %46, %47 : vector<128x8xf32>
    %cst_45 = arith.constant 0.000000e+00 : f32
    %49 = vector.broadcast %cst_45 : f32 to vector<128x8xf32>
    %50 = arith.maximumf %48, %49 : vector<128x8xf32>
    %51 = tpu.concatenate %42, %50 in 1 : vector<128x8xf32>, vector<128x8xf32> -> vector<128x16xf32>
    %52 = vector.shape_cast %51 : vector<128x16xf32> to vector<8x1x16x16xf32>
    %c0_46 = arith.constant 0 : index
    %c0_47 = arith.constant 0 : index
    %c0_48 = arith.constant 0 : index
    %c0_49 = arith.constant 0 : index
    %c0_50 = arith.constant 0 : index
    %53 = vector.load %arg7[%c0_46, %c0_47, %c0_48, %c0_49, %c0_50] : memref<1x8x2x16x16xf32, #tpu.memory_space<vmem>>, vector<1x8x1x16x16xf32>
    %54 = vector.shape_cast %53 : vector<1x8x1x16x16xf32> to vector<8x1x16x16xf32>
    %55 = vector.shape_cast %52 : vector<8x1x16x16xf32> to vector<1x8x1x16x16xf32>
    tpu.vector_store %arg7[%c0_46, %c0_47, %c0_48, %c0_49, %c0_50], %55 {strides = array<i32>} : memref<1x8x2x16x16xf32, #tpu.memory_space<vmem>>, vector<1x8x1x16x16xf32>,
    %56 = tpu.concatenate %28, %29, %31, %32 in 1 : vector<128x4xf32>, vector<128x4xf32>, vector<128x4xf32>, vector<128x4xf32> -> vector<128x16xf32>
    %c2_51 = arith.constant 2 : index
    %c0_52 = arith.constant 0 : index
    %c0_53 = arith.constant 0 : index
    %57 = vector.load %arg5[%c2_51, %c0_52, %c0_53] : memref<4x16x8xf32, #tpu.memory_space<vmem>>, vector<1x16x8xf32>
    %58 = vector.shape_cast %57 : vector<1x16x8xf32> to vector<16x8xf32>
    %cst_54 = arith.constant dense<0.000000e+00> : vector<128x8xf32>
    %59 = tpu.matmul %56, %58, %cst_54 {dimension_numbers = #tpu.dot_dimension_numbers<[1], [0], [0], [1], [0, 0, 1, 1], [], []>} : vector<128x16xf32>, vector<16x8xf32>, vector<128x8xf32> -> vector<128x8xf32>
    %60 = vector.broadcast %34 : vector<1x8xf32> to vector<128x8xf32>
    %61 = arith.addf %59, %60 : vector<128x8xf32>
    %cst_55 = arith.constant 0.000000e+00 : f32
    %62 = vector.broadcast %cst_55 : f32 to vector<128x8xf32>
    %63 = arith.maximumf %61, %62 : vector<128x8xf32>
    %64 = tpu.concatenate %29, %30, %32, %33 in 1 : vector<128x4xf32>, vector<128x4xf32>, vector<128x4xf32>, vector<128x4xf32> -> vector<128x16xf32>
    %c3 = arith.constant 3 : index
    %c0_56 = arith.constant 0 : index
    %c0_57 = arith.constant 0 : index
    %65 = vector.load %arg5[%c3, %c0_56, %c0_57] : memref<4x16x8xf32, #tpu.memory_space<vmem>>, vector<1x16x8xf32>
    %66 = vector.shape_cast %65 : vector<1x16x8xf32> to vector<16x8xf32>
    %cst_58 = arith.constant dense<0.000000e+00> : vector<128x8xf32>
    %67 = tpu.matmul %64, %66, %cst_58 {dimension_numbers = #tpu.dot_dimension_numbers<[1], [0], [0], [1], [0, 0, 1, 1], [], []>} : vector<128x16xf32>, vector<16x8xf32>, vector<128x8xf32> -> vector<128x8xf32>
    %68 = vector.broadcast %34 : vector<1x8xf32> to vector<128x8xf32>
    %69 = arith.addf %67, %68 : vector<128x8xf32>
    %cst_59 = arith.constant 0.000000e+00 : f32
    %70 = vector.broadcast %cst_59 : f32 to vector<128x8xf32>
    %71 = arith.maximumf %69, %70 : vector<128x8xf32>
    %72 = tpu.concatenate %63, %71 in 1 : vector<128x8xf32>, vector<128x8xf32> -> vector<128x16xf32>
    %73 = vector.shape_cast %72 : vector<128x16xf32> to vector<8x1x16x16xf32>
    %c0_60 = arith.constant 0 : index
    %c0_61 = arith.constant 0 : index
    %c1_62 = arith.constant 1 : index
    %c0_63 = arith.constant 0 : index
    %c0_64 = arith.constant 0 : index
    %74 = vector.load %arg7[%c0_60, %c0_61, %c1_62, %c0_63, %c0_64] : memref<1x8x2x16x16xf32, #tpu.memory_space<vmem>>, vector<1x8x1x16x16xf32>
    %75 = vector.shape_cast %74 : vector<1x8x1x16x16xf32> to vector<8x1x16x16xf32>
    %76 = vector.shape_cast %73 : vector<8x1x16x16xf32> to vector<1x8x1x16x16xf32>
    tpu.vector_store %arg7[%c0_60, %c0_61, %c1_62, %c0_63, %c0_64], %76 {strides = array<i32>} : memref<1x8x2x16x16xf32, #tpu.memory_space<vmem>>, vector<1x8x1x16x16xf32>,
    return
  }
  func.func @transform_0(%arg0: i32, %arg1: i32) -> (i32, i32, i32, i32) {
    %c0_i32 = arith.constant 0 : i32
    %c0_i32_0 = arith.constant 0 : i32
    %c0_i32_1 = arith.constant 0 : i32
    return %arg0, %arg1, %c0_i32, %c0_i32_0 : i32, i32, i32, i32
  }
  func.func @transform_1(%arg0: i32, %arg1: i32) -> (i32, i32, i32, i32) {
    %c8_i32 = arith.constant 8 : i32
    %0 = arith.muli %arg1, %c8_i32 : i32
    %c1_i32 = arith.constant 1 : i32
    %1 = arith.subi %0, %c1_i32 : i32
    %c0_i32 = arith.constant 0 : i32
    %2 = arith.maxsi %1, %c0_i32 : i32
    %c0_i32_0 = arith.constant 0 : i32
    %c0_i32_1 = arith.constant 0 : i32
    %c0_i32_2 = arith.constant 0 : i32
    return %arg0, %2, %c0_i32_0, %c0_i32_1 : i32, i32, i32, i32
  }
  func.func @transform_2(%arg0: i32, %arg1: i32) -> (i32, i32, i32, i32) {
    %c1_i32 = arith.constant 1 : i32
    %0 = arith.addi %arg1, %c1_i32 : i32
    %c8_i32 = arith.constant 8 : i32
    %1 = arith.muli %0, %c8_i32 : i32
    %c15_i32 = arith.constant 15 : i32
    %2 = arith.minsi %1, %c15_i32 : i32
    %c0_i32 = arith.constant 0 : i32
    %c0_i32_0 = arith.constant 0 : i32
    %c0_i32_1 = arith.constant 0 : i32
    return %arg0, %2, %c0_i32, %c0_i32_0 : i32, i32, i32, i32
  }
  func.func @transform_3(%arg0: i32, %arg1: i32) -> (i32, i32, i32) {
    %c0_i32 = arith.constant 0 : i32
    %c0_i32_0 = arith.constant 0 : i32
    %c0_i32_1 = arith.constant 0 : i32
    %c0_i32_2 = arith.constant 0 : i32
    return %c0_i32, %c0_i32_0, %c0_i32_1 : i32, i32, i32
  }
  func.func @transform_4(%arg0: i32, %arg1: i32) -> (i32, i32) {
    %c0_i32 = arith.constant 0 : i32
    %c0_i32_0 = arith.constant 0 : i32
    %c0_i32_1 = arith.constant 0 : i32
    return %c0_i32, %c0_i32_0 : i32, i32
  }
  func.func @transform_5(%arg0: i32, %arg1: i32) -> (i32, i32, i32, i32, i32) {
    %c0_i32 = arith.constant 0 : i32
    %c0_i32_0 = arith.constant 0 : i32
    %c0_i32_1 = arith.constant 0 : i32
    %c0_i32_2 = arith.constant 0 : i32
    return %arg0, %arg1, %c0_i32, %c0_i32_0, %c0_i32_1 : i32, i32, i32, i32, i32
  }
}

</mosaic_0001>

<bundles_post_ra>
// kernel: tpu_custom_call.1
= control target key start
LH: loop header
LB: loop body
LE: loop exit
PB: predicated region body
PF: predicated region fallthrough
CT: control target
= control target key end

     0   :  { %s3646_s0 = inlined_call_operand.vmem [shape: f32[2,16,16,4], index: 0, kind: input, shape index: {}]   ;;  %s3647_s1 = inlined_call_operand.vmem [shape: f32[2,16,16,4], index: 1, kind: input, shape index: {}]   ;;  %s3648_s2 = inlined_call_operand.vmem [shape: f32[2,16,16,4], index: 2, kind: input, shape index: {}]   ;;  %s3649_s3 = inlined_call_operand.vmem [shape: f32[4,16,8], index: 3, kind: input, shape index: {}]   ;;  %s3650_s4 = inlined_call_operand.vmem [shape: f32[1,8], index: 4, kind: input, shape index: {}]   ;;  %s3651_s5 = inlined_call_operand.hbm [shape: f32[2,16,2,16,16], index: 5, kind: output, shape index: {}]  }
   0x1   :  { %3656 = sst [smem:[#allocation9_spill]] %s3646_s0 }
   0x2   :  { %10 = vsyncpa [#allocation4], 0 }
   0x3   :  { %12 = vsyncpa [#allocation4 + $0x1], 0  ;;  %s2667_s18 = smov 0   ;;  %s2669_s19 = smov 0  }
   0x4   :  { %s2671_s20 = smov 0   ;;  %s2673_s21 = smov 0  }
   0x5   :  { %s2675_s22 = smov 0   ;;  %s2677_s23 = smov 0  }
   0x6   :  { %s2679_s24 = smov 0   ;;  %s2681_s25 = smov 0  }
   0x7 LB: > { %3657 = sst [smem:[#allocation6_spill]] %s2623_s24  ;;  %s2117_s26 = sadd.s32 4294967295, %s2627_s25   ;;  %s2627_s25 = sphi %s2681_s25, %s18_s25   ;;  %s2623_s24 = sphi %s2679_s24, %s3667_s24   ;;  %s2619_s23 = sphi %s2677_s23, %s3672_s23   ;;  %s2615_s22 = sphi %s2675_s22, %s3665_s22   ;;  %s2611_s21 = sphi %s2673_s21, %s3671_s21   ;;  %s2607_s20 = sphi %s2671_s20, %s3670_s20   ;;  %s2603_s19 = sphi %s2669_s19, %s3669_s19   ;;  %s2599_s18 = sphi %s2667_s18, %s3668_s18  }
   0x8   : > { %s2118_s27 = sadd.s32 4294967294, %s2627_s25   ;;  %s27_s28 = sadd.s32 1, %s2619_s23 }
   0x9   : > { %p28_p0 = scmp.ge.s32.totalorder %s27_s28, 2  ;;  %s30_s29 = sadd.s32 1, %s2623_s24 }
   0xa   : > { %p191_p1 = scmp.ne.s32.totalorder %s2607_s20, %s2603_s19  ;;  %p192_p2 = scmp.eq.s32.totalorder %s2117_s26, 3 }
   0xb   : > { %s3674_s28 = smov (%p28_p0, %s27_s28), 0  ;;  %s3676_s29 = smov (!%p28_p0, %s30_s29), %s2623_s24 }
   0xc   : > { %3658 = sst [smem:[#allocation7_spill]] %s3674_s28  ;;  %s177_s30 = ssub.s32 %s2619_s23, %s3674_s28 }
   0xd   : > { %p2718_p3 = por %p192_p2, %p191_p1  ;;  %p32_p4 = scmp.ge.s32.totalorder %s3676_s29, 2 }
   0xe   : > { %p197_p5 = scmp.ne.s32.totalorder %s2603_s19, %s2599_s18  ;;  %p198_p6 = scmp.eq.s32.totalorder %s2118_s27, 3 }
   0xf   : > { %p2127_p7 = scmp.ge.s32.totalorder %s2627_s25, 1  ;;  %s3678_s29 = smov (%p32_p4, %s3676_s29), 0 }
  0x10   : > { %3660 = sst [smem:[#allocation8_spill]] %s3678_s29  ;;  %p2727_p8 = por %p198_p6, %p197_p5 }
  0x11   : > { %p276_p9 = scmp.lt.s32.totalorder %s2627_s25, 5  ;;  %s176_s8 = ssub.s32 %s2623_s24, %s3678_s29 }
  0x12   : > { %s181_s9 = sadd.s32 1, %s2607_s20  ;;  %s178_s10 = sor.u32 %s177_s30, %s176_s8 }
  0x13   : > { %p277_p10 = pnand %p2127_p7, %p276_p9  ;;  %p179_p11 = scmp.eq.s32.totalorder %s178_s10, 0 }
  0x14   : > { %s3653_s12 = sand.u32 (!%p277_p10), 1, %s2603_s19   ;;  %s2129_s13 = sshll.u32 (!%p277_p10), %s2611_s21, 3  ;;  %vm398_vm0 = vcmask (!%p277_p10), 31744  }
  0x15   : > { %s2736_s11 = scalar_select %p179_p11, %s2607_s20, %s181_s9  }
  0x16   : > { %280 = sbr.rel (%p277_p10) target bundleno = 652 (0x28c), region = 40  ;;  %s2742_s14 = sshll.u32 (!%p277_p10), %s3653_s12, 8 }
  0x17   : > { %p336_p12 = scmp.lt.s32.totalorder (!%p277_p10), %s2615_s22, 1  ;;  %p338_p13 = scmp.lt.s32.totalorder (!%p277_p10), %s2129_s13, 15 }
  0x18   : > { %s2134_s26 = sadd.s32 (!%p277_p10), 4294967295, %s2129_s13  ;;  %s2253_s9 = sadd.s32 (!%p277_p10), 8, %s2129_s13 }
  0x19   : > { %p348_p0 = scmp.gt.s32.totalorder (!%p277_p10), %s2134_s26, 0  ;;  %p2135_p1 = scmp.lt.s32.totalorder (!%p277_p10), %s2134_s26, 15 }
  0x1a   : > { %s3662_s0 = sld [smem:[#allocation9_spill]] (!%p277_p10)  ;;  %p2754_p2 = scmp.lt.s32.totalorder (!%p277_p10), %s2253_s9, 15 }
  0x1b   : > { %p2150_p4 = scmp.ne.s32.totalorder (!%p277_p10), %s2611_s21, 0 }
  0x1d   : > { %s337_s15 = scalar_select %p336_p12, %s2615_s22, 1 }
  0x1e   : > { %s339_s16 = scalar_select %p338_p13, %s2129_s13, 15 }
  0x1f   : > { %s2746_s17 = sshll.u32 %s337_s15, 5  ;;  %s3680_s9 = smov (!%p2754_p2, %s2253_s9), 15  ;;  %v2629_v20 = vmov (!%p2150_p4), 0.0  }
  0x20   : > { %s2130_s27 = sshll.u32 %s339_s16, 1  ;;  %s3684_s9 = smov (!%p2754_p2, %s3680_s9), 15 }
  0x21   : > { %s342_s30 = sadd.s32 %s2746_s17, %s2130_s27 }
  0x22   : > { %s2132_s8 = sshll.u32 %s342_s30, 3 }
  0x23   : > { %s2752_s12 = scalar_lea.vmem %s3662_s0, %s2132_s8 }
  0x24   : > { %v381_v0 = vld [vmem:[%s2752_s12] sm:$0xff]  ;;  %v382_v1 = vld [vmem:[%s2752_s12 + $0x8] sm:$0xff]  ;;  %v383_v2 = vld [vmem:[%s2752_s12 + $0x10] sm:$0xff]  ;;  %s349_s29 = scalar_select %p348_p0, %s2134_s26, 0 }
  0x25   : > { %399 = vst.msk [vmem:[#allocation2 + $0x19] sm:$0xff] %vm398_vm0, %v381_v0  ;;  %400 = vst.msk [vmem:[#allocation2 + $0x21] sm:$0xff] %vm398_vm0, %v382_v1  ;;  %v384_v3 = vld [vmem:[%s2752_s12 + $0x18] sm:$0xff]  ;;  %v385_v4 = vld [vmem:[%s2752_s12 + $0x20] sm:$0xff]  ;;  %s2147_s26 = sshll.u32 %s3684_s9, 1 }
  0x26   : > { %401 = vst.msk [vmem:[#allocation2 + $0x31] sm:$0xff] %vm398_vm0, %v383_v2  ;;  %v386_v5 = vld [vmem:[%s2752_s12 + $0x28] sm:$0xff]  ;;  %402 = vst.msk [vmem:[#allocation2 + $0x39] sm:$0xff] %vm398_vm0, %v384_v3  ;;  %v387_v6 = vld [vmem:[%s2752_s12 + $0x30] sm:$0xff]  ;;  %s3682_s29 = smov (!%p2135_p1, %s349_s29), 15  ;;  %s373_s30 = sadd.s32 %s2147_s26, %s2746_s17 }
  0x27   : > { %403 = vst.msk [vmem:[#allocation2 + $0x49] sm:$0xff] %vm398_vm0, %v385_v4  ;;  %404 = vst.msk [vmem:[#allocation2 + $0x51] sm:$0xff] %vm398_vm0, %v386_v5  ;;  %v388_v7 = vld [vmem:[%s2752_s12 + $0x38] sm:$0xff]  ;;  %v389_v8 = vld [vmem:[%s2752_s12 + $0x40] sm:$0xff]  ;;  %s2140_s13 = sshll.u32 %s3682_s29, 1  ;;  %s2149_s0 = sshll.u32 %s373_s30, 3 }
  0x28   : > { %405 = vst.msk [vmem:[#allocation2 + $0x61] sm:$0xff] %vm398_vm0, %v387_v6  ;;  %406 = vst.msk [vmem:[#allocation2 + $0x69] sm:$0xff] %vm398_vm0, %v388_v7  ;;  %v390_v9 = vld [vmem:[%s2752_s12 + $0x48] sm:$0xff]  ;;  %v391_v10 = vld [vmem:[%s2752_s12 + $0x50] sm:$0xff]  ;;  %s356_s16 = sadd.s32 %s2140_s13, %s2746_s17  ;;  %s375_s24 = scalar_lea.vmem %s3648_s2, %s2149_s0 }
  0x29   : > { %407 = vst.msk [vmem:[#allocation2 + $0x79] sm:$0xff] %vm398_vm0, %v389_v8  ;;  %v392_v11 = vld [vmem:[%s2752_s12 + $0x58] sm:$0xff]  ;;  %408 = vst.msk [vmem:[#allocation2 + $0x81] sm:$0xff] %vm398_vm0, %v390_v9  ;;  %v393_v12 = vld [vmem:[%s2752_s12 + $0x60] sm:$0xff]  ;;  %s2142_s27 = sshll.u32 %s356_s16, 3  ;;  %427 = sbr.rel (%p2150_p4) target bundleno = 48 (0x30), region = 44 }
  0x2a   : > { %409 = vst.msk [vmem:[#allocation2 + $0x91] sm:$0xff] %vm398_vm0, %v391_v10  ;;  %410 = vst.msk [vmem:[#allocation2 + $0x99] sm:$0xff] %vm398_vm0, %v392_v11  ;;  %v394_v13 = vld [vmem:[%s2752_s12 + $0x68] sm:$0xff]  ;;  %v395_v14 = vld [vmem:[%s2752_s12 + $0x70] sm:$0xff]  ;;  %s358_s15 = scalar_lea.vmem %s3647_s1, %s2142_s27 }
  0x2b   : > { %411 = vst.msk [vmem:[#allocation2 + $0xa9] sm:$0xff] %vm398_vm0, %v393_v12  ;;  %412 = vst.msk [vmem:[#allocation2 + $0xb1] sm:$0xff] %vm398_vm0, %v394_v13  ;;  %v396_v15 = vld [vmem:[%s2752_s12 + $0x78] sm:$0xff]  ;;  %v415_v16 = vld [vmem:[%s358_s15] sm:$0xff]  ;;  %s2808_s12 = scalar_lea.vmem [#allocation3], %s2742_s14 }
  0x2c   : > { %413 = vst.msk [vmem:[#allocation2 + $0xc1] sm:$0xff] %vm398_vm0, %v395_v14  ;;  %414 = vst.msk [vmem:[#allocation2 + $0xc9] sm:$0xff] %vm398_vm0, %v396_v15  ;;  %v416_v17 = vld [vmem:[%s358_s15 + $0x8] sm:$0xff]  ;;  %v419_v18 = vld [vmem:[%s375_s24] sm:$0xff] }
  0x2d   : > { %417 = vst.msk [vmem:[#allocation2 + $0x1] sm:$0xff] %vm398_vm0, %v415_v16  ;;  %418 = vst.msk [vmem:[#allocation2 + $0x9] sm:$0xff] %vm398_vm0, %v416_v17  ;;  %v420_v19 = vld [vmem:[%s375_s24 + $0x8] sm:$0xff] }
  0x2e   : > { %422 = vst.msk [vmem:[#allocation2 + $0xd9] sm:$0xff] %vm398_vm0, %v419_v18  ;;  %423 = vst.msk [vmem:[#allocation2 + $0xe1] sm:$0xff] %vm398_vm0, %v420_v19 }
  0x2f   : > { %428 = vst.msk [vmem:[#allocation2 + $0x1] sm:$0xff] (!%p2150_p4), %vm398_vm0, %v2629_v20  ;;  %429 = vst.msk [vmem:[#allocation2 + $0x9] sm:$0xff] (!%p2150_p4), %vm398_vm0, %v2629_v20 }
  0x30 PF: > { %p2151_p5 = scmp.ne.s32.totalorder %s2611_s21, 1 }
  0x31   : > { %v2630_v21 = vmov (!%p2151_p5), 0.0  }
  0x32   : > { %433 = sbr.rel (%p2151_p5) target bundleno = 57 (0x39), region = 48  ;;  %434 = vst.msk [vmem:[#allocation2 + $0xd9] sm:$0xff] (!%p2151_p5), %vm398_vm0, %v2630_v21  ;;  %435 = vst.msk [vmem:[#allocation2 + $0xe1] sm:$0xff] (!%p2151_p5), %vm398_vm0, %v2630_v21 }
  0x39 PF: > { %v497_v22 = vld [vmem:[#allocation2 + $0x2] sm:$0xff]  ;;  %v2816_v23 = vld [vmem:[#allocation2 + $0x19] sm:$0xff]  ;;  %vm436_vm1 = vcmask 24576   ;;  %s2631_s0 = smov 4   ;;  %s2632_s24 = smov 8   ;;  %v2633_v26 = vmov 0.0  }
  0x3a   : > { %980 = vrot.lane.b32.xlu0 %v497_v22, %s2631_s0  ;;  %1028 = vrot.lane.b32.xlu1 %v2816_v23, %s2632_s24  ;;  %v499_v24 = vld [vmem:[#allocation2 + $0x1a] sm:$0xff]  ;;  %448 = vst.msk [vmem:[#allocation2 + $0x29] sm:$0x1] %vm436_vm1, %v2633_v26  ;;  %437 = vst.msk [vmem:[#allocation2] sm:$0x1] %vm436_vm1, %v2633_v26  ;;  %s2634_s28 = smov 12  }
  0x3b   : > { %v2821_v25 = vld [vmem:[#allocation2 + $0x21] sm:$0xff]  ;;  %438 = vst.msk [vmem:[#allocation2 + $0x18] sm:$0x1] %vm436_vm1, %v2633_v26  ;;  %439 = vst.msk [vmem:[#allocation2 + $0x30] sm:$0x1] %vm436_vm1, %v2633_v26  ;;  %v2169_v29 = vld [vmem:[%s3649_s3 + $0x10] sm:$0xff] }
  0x3c   : > { %440 = vst.msk [vmem:[#allocation2 + $0x48] sm:$0x1] %vm436_vm1, %v2633_v26  ;;  %441 = vst.msk [vmem:[#allocation2 + $0x60] sm:$0x1] %vm436_vm1, %v2633_v26  ;;  %v2170_v30 = vld [vmem:[%s3649_s3 + $0x18] sm:$0xff]  ;;  %v2870_v37 = vld [vmem:[#allocation2 + $0x49] sm:$0xff] }
  0x3d   : > { %442 = vst.msk [vmem:[#allocation2 + $0x78] sm:$0x1] %vm436_vm1, %v2633_v26  ;;  %443 = vst.msk [vmem:[#allocation2 + $0x90] sm:$0x1] %vm436_vm1, %v2633_v26  ;;  %v2856_v31 = vld [vmem:[#allocation2 + $0x39] sm:$0xff]  ;;  %v2858_v32 = vld [vmem:[#allocation2 + $0x31] sm:$0xff]  ;;  %v2443_v33 = vpack.c.bf16 %v2170_v30, %v2169_v29 }
  0x3e   : > { %444 = vst.msk [vmem:[#allocation2 + $0xa8] sm:$0x1] %vm436_vm1, %v2633_v26  ;;  %445 = vst.msk [vmem:[#allocation2 + $0xc0] sm:$0x1] %vm436_vm1, %v2633_v26  ;;  %1078 = vrot.lane.b32.xlu0 %v499_v24, %s2634_s28  ;;  %1030 = vrot.lane.b32.xlu1 %v2821_v25, %s2632_s24  ;;  %v501_v35 = vld [vmem:[#allocation2 + $0x32] sm:$0xff]  ;;  %v503_v39 = vld [vmem:[#allocation2 + $0x4a] sm:$0xff] }
  0x3f   : > { %446 = vst.msk [vmem:[#allocation2 + $0xd8] sm:$0x1] %vm436_vm1, %v2633_v26  ;;  %447 = vst.msk [vmem:[#allocation2 + $0x11] sm:$0x1] %vm436_vm1, %v2633_v26  ;;  %2444 = vmatprep.subr.bf16.mxu1 %v2443_v33  ;;  %v2868_v36 = vld [vmem:[#allocation2 + $0x51] sm:$0xff]  ;;  %v2880_v40 = vld [vmem:[#allocation2 + $0x69] sm:$0xff] }
  0x40   : > { %449 = vst.msk [vmem:[#allocation2 + $0x41] sm:$0x1] %vm436_vm1, %v2633_v26  ;;  %450 = vst.msk [vmem:[#allocation2 + $0x59] sm:$0x1] %vm436_vm1, %v2633_v26  ;;  %2446 = vmatpush3.bf16.msra.mxu1 %v2443_v33  ;;  %v2882_v41 = vld [vmem:[#allocation2 + $0x61] sm:$0xff]  ;;  %v2894_v45 = vld [vmem:[#allocation2 + $0x79] sm:$0xff] }
  0x41   : > { %451 = vst.msk [vmem:[#allocation2 + $0x71] sm:$0x1] %vm436_vm1, %v2633_v26  ;;  %452 = vst.msk [vmem:[#allocation2 + $0x89] sm:$0x1] %vm436_vm1, %v2633_v26  ;;  %v500_v27 = vld [vmem:[#allocation2 + $0x22] sm:$0xff]  ;;  %v2205_v46 = vld [vmem:[%s3649_s3 + $0x30] sm:$0xff] }
  0x42   : > { %453 = vst.msk [vmem:[#allocation2 + $0xa1] sm:$0x1] %vm436_vm1, %v2633_v26  ;;  %454 = vst.msk [vmem:[#allocation2 + $0xb9] sm:$0x1] %vm436_vm1, %v2633_v26  ;;  %1080 = vrot.lane.b32.xlu1 %v500_v27, %s2634_s28  ;;  %v505_v43 = vld [vmem:[#allocation2 + $0x62] sm:$0xff]  ;;  %v2206_v47 = vld [vmem:[%s3649_s3 + $0x38] sm:$0xff] }
  0x43   : > { %455 = vst.msk [vmem:[#allocation2 + $0xd1] sm:$0x1] %vm436_vm1, %v2633_v26  ;;  %456 = vst.msk [vmem:[#allocation2 + $0xe9] sm:$0x1] %vm436_vm1, %v2633_v26  ;;  %v2892_v44 = vld [vmem:[#allocation2 + $0x81] sm:$0xff]  ;;  %v2906_v48 = vpack.c.bf16 %v2206_v47, %v2205_v46  ;;  %v2913_v51 = vld [vmem:[#allocation2 + $0x99] sm:$0xff] }
  0x44   : > { %v507_v50 = vld [vmem:[#allocation2 + $0x7a] sm:$0xff]  ;;  %v2915_v52 = vld [vmem:[#allocation2 + $0x91] sm:$0xff]  ;;  %v2927_v56 = vld [vmem:[#allocation2 + $0xa9] sm:$0xff]  ;;  %vm712_vm2 = vcmask 64512   ;;  %vm729_vm3 = vcmask 97280   ;;  %vm754_vm4 = vcmask 130048  }
  0x45   : > { %2452 = vmatprep.subr.bf16.mxu1 %v2906_v48  ;;  %v509_v54 = vld [vmem:[#allocation2 + $0x92] sm:$0xff]  ;;  %v511_v58 = vld [vmem:[#allocation2 + $0xaa] sm:$0xff]  ;;  %v2939_v60 = vld [vmem:[#allocation2 + $0xc1] sm:$0xff]  ;;  %s2254_s16 = sshll.u32 %s2611_s21, 5  ;;  %s2242_s26 = sshll.u32 %s2615_s22, 6 }
  0x46   : > { %v498_v28 = vld [vmem:[#allocation2 + $0xa] sm:$0xff]  ;;  %986 = vrot.lane.b32.xlu1 %v500_v27, %s2631_s0  ;;  %v513_v61 = vld [vmem:[#allocation2 + $0xc2] sm:$0xff]  ;;  %v2957_v5 = vld [vmem:[#allocation2 + $0x18] sm:$0xff]  ;;  %s1987_s27 = sadd.s32 %s2254_s16, %s2242_s26  ;;  %s1990_s22 = sshll.u32 %s2808_s12, 4  ;;  %s3584_s22 = int_to_ptr.vmem [resolvable:$true] %s1990_s22 }
  0x47   : > { %982 = vrot.lane.b32.xlu0 %v498_v28, %s2631_s0  ;;  %v502_v34 = vld [vmem:[#allocation2 + $0x3a] sm:$0xff]  ;;  %v504_v38 = vld [vmem:[#allocation2 + $0x52] sm:$0xff]  ;;  %v2937_v59 = vld [vmem:[#allocation2 + $0xc9] sm:$0xff]  ;;  %s2243_s21 = sshll.u32 %s1987_s27, 7  ;;  %s3664_s15 = sand.u32 1, %s2603_s19  }
  0x48   : > { %v506_v42 = vld [vmem:[#allocation2 + $0x6a] sm:$0xff]  ;;  %v508_v49 = vld [vmem:[#allocation2 + $0x82] sm:$0xff]  ;;  %v2969_v6 = vld [vmem:[#allocation2 + $0xd9] sm:$0xff]  ;;  %s3581_s10 = scalar_lea.hbm %s3651_s5, %s2243_s21  ;;  %s3593_s29 = scalar_lea.sflag [#allocation4], %s3664_s15 }
  0x49   : > { %v510_v53 = vld [vmem:[#allocation2 + $0x9a] sm:$0xff]  ;;  %v2925_v55 = vld [vmem:[#allocation2 + $0xb1] sm:$0xff]  ;;  %v747_v0 = vld [vmem:[%s3649_s3 + $0x8] sm:$0xff]  ;;  %s2533_s14 = scalar_lea.vmem %s3584_s22, 4096  ;;  %s2635_s17 = smov [#allocation3]  }
  0x4a   : > { %1034 = vrot.lane.b32.xlu1 %v2856_v31, %s2632_s24  ;;  %v512_v57 = vld [vmem:[#allocation2 + $0xb2] sm:$0xff]  ;;  %v514_v62 = vld [vmem:[#allocation2 + $0xca] sm:$0xff]  ;;  %v746_v63 = vld [vmem:[%s3649_s3] sm:$0xff]  ;;  %p2534_p6 = scmp.ne.s32.totalorder %s3584_s22, %s2533_s14  ;;  %s2537_s9 = sshll.u32 %s2635_s17, 4  ;;  %s2538_s9 = int_to_ptr.vmem [resolvable:$false] %s2537_s9 }
  0x4b   : > { %984 = vrot.lane.b32.xlu0 %v499_v24, %s2631_s0  ;;  %v2439_v1 = vpack.c.bf16 %v747_v0, %v746_v63  ;;  %v478_v2 = vld [vmem:[#allocation2 + $0x9] sm:$0xff]  ;;  %v477_v3 = vld [vmem:[#allocation2 + $0x1] sm:$0xff]  ;;  %v2990_v17 = vld [vmem:[#allocation2 + $0x38] sm:$0xff]  ;;  %s2539_s13 = scalar_lea.vmem %s2538_s9, 8192  ;;  %p2540_p10 = scmp.lt.s32.totalorder %s3584_s22, %s2538_s9 }
  0x4c   : > { %v2955_v4 = vld [vmem:[#allocation2 + $0x20] sm:$0xff]  ;;  %v2982_v15 = vld [vmem:[#allocation2 + $0x30] sm:$0xff]  ;;  %v3048_v63 = vld [vmem:[#allocation2 + $0x68] sm:$0xff]  ;;  %p2535_p7 = pnand %p2534_p6, %p2718_p3  ;;  %p2541_p11 = scmp.lt.s32.totalorder %s2539_s13, %s2533_s14 }
  0x4d   : > { %2440 = vmatprep.subr.bf16.mxu0 %v2439_v1  ;;  %v515_v9 = vld [vmem:[#allocation2 + $0xda] sm:$0xff]  ;;  %v516_v18 = vld [vmem:[#allocation2 + $0xe2] sm:$0xff] }
  0x4e   : > { %1084 = vrot.lane.b32.xlu1 %v502_v34, %s2634_s28  ;;  %2442 = vmatpush3.bf16.msra.mxu0 %v2439_v1  ;;  %v2975_v10 = vld [vmem:[#allocation2 + $0xe1] sm:$0xff]  ;;  %p2536_p9 = pneg %p2535_p7  ;;  %p2542_p12 = por %p2541_p11, %p2540_p10 }
  0x4f   : > { %1032 = vrot.lane.b32.xlu0 %v2858_v32, %s2632_s24 }
  0x50   : > { %p2543_p13 = pnand %p2542_p12, %p2536_p9 }
  0x52   : > { %990 = vrot.lane.b32.xlu1 %v502_v34, %s2631_s0  ;;  %v3012_v34 = vld [vmem:[#allocation2 + $0x48] sm:$0xff] }
  0x53   : > { %1082 = vrot.lane.b32.xlu0 %v501_v35, %s2634_s28 }
  0x56   : > { %1038 = vrot.lane.b32.xlu1 %v2868_v36, %s2632_s24 }
  0x57   : > { %988 = vrot.lane.b32.xlu0 %v501_v35, %s2631_s0 }
  0x5a   : > { %1088 = vrot.lane.b32.xlu1 %v504_v38, %s2634_s28 }
  0x5b   : > { %1036 = vrot.lane.b32.xlu0 %v2870_v37, %s2632_s24 }
  0x5e   : > { %994 = vrot.lane.b32.xlu1 %v504_v38, %s2631_s0 }
  0x5f   : > { %1086 = vrot.lane.b32.xlu0 %v503_v39, %s2634_s28 }
  0x62   : > { %1042 = vrot.lane.b32.xlu1 %v2880_v40, %s2632_s24 }
  0x63   : > { %992 = vrot.lane.b32.xlu0 %v503_v39, %s2631_s0 }
  0x66   : > { %1092 = vrot.lane.b32.xlu1 %v506_v42, %s2634_s28 }
  0x67   : > { %1040 = vrot.lane.b32.xlu0 %v2882_v41, %s2632_s24 }
  0x6a   : > { %998 = vrot.lane.b32.xlu1 %v506_v42, %s2631_s0 }
  0x6b   : > { %1090 = vrot.lane.b32.xlu0 %v505_v43, %s2634_s28 }
  0x6e   : > { %1046 = vrot.lane.b32.xlu1 %v2892_v44, %s2632_s24 }
  0x6f   : > { %996 = vrot.lane.b32.xlu0 %v505_v43, %s2631_s0  ;;  %v3016_v43 = vld [vmem:[#allocation2 + $0x50] sm:$0xff] }
  0x72   : > { %1096 = vrot.lane.b32.xlu1 %v508_v49, %s2634_s28 }
  0x73   : > { %1044 = vrot.lane.b32.xlu0 %v2894_v45, %s2632_s24 }
  0x76   : > { %1002 = vrot.lane.b32.xlu1 %v508_v49, %s2631_s0 }
  0x77   : > { %1094 = vrot.lane.b32.xlu0 %v507_v50, %s2634_s28 }
  0x7a   : > { %1050 = vrot.lane.b32.xlu1 %v2913_v51, %s2632_s24 }
  0x7b   : > { %1000 = vrot.lane.b32.xlu0 %v507_v50, %s2631_s0 }
  0x7e   : > { %1100 = vrot.lane.b32.xlu1 %v510_v53, %s2634_s28 }
  0x7f   : > { %1048 = vrot.lane.b32.xlu0 %v2915_v52, %s2632_s24 }
  0x82   : > { %1006 = vrot.lane.b32.xlu1 %v510_v53, %s2631_s0 }
  0x83   : > { %1098 = vrot.lane.b32.xlu0 %v509_v54, %s2634_s28 }
  0x86   : > { %1054 = vrot.lane.b32.xlu1 %v2925_v55, %s2632_s24 }
  0x87   : > { %1004 = vrot.lane.b32.xlu0 %v509_v54, %s2631_s0  ;;  %v3044_v54 = vld [vmem:[#allocation2 + $0x60] sm:$0xff] }
  0x8a   : > { %1104 = vrot.lane.b32.xlu1 %v512_v57, %s2634_s28 }
  0x8b   : > { %1052 = vrot.lane.b32.xlu0 %v2927_v56, %s2632_s24 }
  0x8e   : > { %1010 = vrot.lane.b32.xlu1 %v512_v57, %s2631_s0 }
  0x8f   : > { %1102 = vrot.lane.b32.xlu0 %v511_v58, %s2634_s28 }
  0x92   : > { %1058 = vrot.lane.b32.xlu1 %v2937_v59, %s2632_s24 }
  0x93   : > { %1008 = vrot.lane.b32.xlu0 %v511_v58, %s2631_s0 }
  0x96   : > { %1108 = vrot.lane.b32.xlu1 %v514_v62, %s2634_s28 }
  0x97   : > { %1056 = vrot.lane.b32.xlu0 %v2939_v60, %s2632_s24 }
  0x9a   : > { %536 = vrot.lane.b32.xlu1 %v478_v2, %s2631_s0 }
  0x9b   : > { %1106 = vrot.lane.b32.xlu0 %v513_v61, %s2634_s28 }
  0x9e   : > { %600 = vrot.lane.b32.xlu1 %v2955_v4, %s2632_s24 }
  0x9f   : > { %534 = vrot.lane.b32.xlu0 %v477_v3, %s2631_s0 }
  0xa2   : > { %1680 = vrot.lane.b32.xlu1 %v513_v61, %s2631_s0 }
  0xa3   : > { %598 = vrot.lane.b32.xlu0 %v2957_v5, %s2632_s24 }
  0xa6   : > { %1682 = vrot.lane.b32.xlu1 %v514_v62, %s2631_s0 }
  0xa7   : > { %648 = vrot.lane.b32.xlu0 %v2816_v23, %s2634_s28 }
  0xaa   : > { %538 = vrot.lane.b32.xlu1 %v2816_v23, %s2631_s0 }
  0xab   : > { %650 = vrot.lane.b32.xlu0 %v2821_v25, %s2634_s28 }
  0xac   : > { %v981_v7 = vpop.permute.xlu0 %980  ;;  %v1029_v8 = vpop.permute.xlu1 %1028 }
  0xad   : > { %v1126_v11 = vsel %vm398_vm0, %v477_v3, %v981_v7 }
  0xae   : > { %1694 = vrot.lane.b32.xlu1 %v515_v9, %s2634_s28  ;;  %v1142_v12 = vsel %vm712_vm2, %v1126_v11, %v1029_v8  ;;  %v3076_v9 = vld [vmem:[#allocation2 + $0x78] sm:$0xff] }
  0xaf   : > { %1686 = vrot.lane.b32.xlu0 %v2969_v6, %s2632_s24 }
  0xb0   : > { %v1079_v13 = vpop.permute.xlu0 %1078  ;;  %v1031_v14 = vpop.permute.xlu1 %1030 }
  0xb1   : > { %v1158_v16 = vsel %vm729_vm3, %v1142_v12, %v1079_v13 }
  0xb2   : > { %2359 = vmatprep.mubr.msk.f32.mxu1 %vm754_vm4, %v1158_v16  ;;  %602 = vrot.lane.b32.xlu1 %v2982_v15, %s2632_s24  ;;  %v3080_v16 = vld [vmem:[#allocation2 + $0x80] sm:$0xff] }
  0xb3   : > { %1688 = vrot.lane.b32.xlu0 %v2975_v10, %s2632_s24 }
  0xb4   : > { %v1081_v19 = vpop.permute.xlu1 %1080 }
  0xb6   : > { %604 = vrot.lane.b32.xlu1 %v2990_v17, %s2632_s24 }
  0xb7   : > { %540 = vrot.lane.b32.xlu0 %v2821_v25, %s2631_s0 }
  0xb8   : > { %v987_v26 = vpop.permute.xlu1 %986 }
  0xb9   : > { %v983_v20 = vpop.permute.xlu0 %982  ;;  %v1129_v30 = vsel %vm398_vm0, %v2821_v25, %v987_v26 }
  0xba   : > { %v1127_v21 = vsel %vm398_vm0, %v478_v2, %v983_v20  ;;  %654 = vrot.lane.b32.xlu1 %v2856_v31, %s2634_s28 }
  0xbb   : > { %v1143_v22 = vsel %vm712_vm2, %v1127_v21, %v1031_v14  ;;  %1696 = vrot.lane.b32.xlu0 %v516_v18, %s2634_s28 }
  0xbc   : > { %v1159_v24 = vsel %vm729_vm3, %v1143_v22, %v1081_v19  ;;  %v1035_v28 = vpop.permute.xlu1 %1034  ;;  %v2187_v22 = vld [vmem:[%s3649_s3 + $0x20] sm:$0xff] }
  0xbd   : > { %2360 = vmatmul.mubr.msk.f32.vlgmr.msra.gmra.mrb[0].mxu1 %vm754_vm4, %v1159_v24  ;;  %v985_v27 = vpop.permute.xlu0 %984  ;;  %v1145_v35 = vsel %vm712_vm2, %v1129_v30, %v1035_v28  ;;  %v2188_v24 = vld [vmem:[%s3649_s3 + $0x28] sm:$0xff] }
  0xbe   : > { %2454 = vmatpush3.bf16.msra.mxu1 %v2906_v48  ;;  %544 = vrot.lane.b32.xlu1 %v2856_v31, %s2631_s0  ;;  %v1128_v33 = vsel %vm398_vm0, %v2816_v23, %v985_v27  ;;  %v3108_v26 = vpack.c.bf16 %v2188_v24, %v2187_v22 }
  0xbf   : > { %652 = vrot.lane.b32.xlu0 %v2858_v32, %s2634_s28 }
  0xc0   : > { %v1085_v39 = vpop.permute.xlu1 %1084  ;;  %2448 = vmatprep.subr.bf16.mxu0 %v3108_v26 }
  0xc1   : > { %v1033_v29 = vpop.permute.xlu0 %1032  ;;  %v3019_v46 = vsel %vm729_vm3, %v1145_v35, %v1085_v39  ;;  %v3120_v39 = vld [vmem:[#allocation2 + $0x98] sm:$0xff] }
  0xc2   : > { %v1144_v38 = vsel %vm712_vm2, %v1128_v33, %v1033_v29  ;;  %608 = vrot.lane.b32.xlu1 %v3016_v43, %s2632_s24  ;;  %v3116_v29 = vld [vmem:[#allocation2 + $0x90] sm:$0xff] }
  0xc3   : > { %542 = vrot.lane.b32.xlu0 %v2858_v32, %s2631_s0 }
  0xc4   : > { %v991_v23 = vpop.permute.xlu1 %990 }
  0xc5   : > { %v1083_v42 = vpop.permute.xlu0 %1082  ;;  %v1131_v50 = vsel %vm398_vm0, %v2856_v31, %v991_v23 }
  0xc6   : > { %v3022_v47 = vsel %vm729_vm3, %v1144_v38, %v1083_v42  ;;  %658 = vrot.lane.b32.xlu1 %v2868_v36, %s2634_s28 }
  0xc7   : > { %2362 = vmatprep.mubr.msk.f32.mxu1 %vm754_vm4, %v3022_v47  ;;  %606 = vrot.lane.b32.xlu0 %v3012_v34, %s2632_s24 }
  0xc8   : > { %2363 = vmatmul.mubr.msk.f32.gmra.mrb[2].mxu1 %vm754_vm4, %v3019_v46  ;;  %v1039_v48 = vpop.permute.xlu1 %1038 }
  0xc9   : > { %v989_v25 = vpop.permute.xlu0 %988  ;;  %v1147_v57 = vsel %vm712_vm2, %v1131_v50, %v1039_v48 }
  0xca   : > { %v1130_v53 = vsel %vm398_vm0, %v2858_v32, %v989_v25  ;;  %548 = vrot.lane.b32.xlu1 %v2868_v36, %s2631_s0 }
  0xcb   : > { %656 = vrot.lane.b32.xlu0 %v2870_v37, %s2634_s28 }
  0xcc   : > { %v1089_v61 = vpop.permute.xlu1 %1088 }
  0xcd   : > { %v1037_v49 = vpop.permute.xlu0 %1036  ;;  %v3051_v0 = vsel %vm729_vm3, %v1147_v57, %v1089_v61 }
  0xce   : > { %v1146_v58 = vsel %vm712_vm2, %v1130_v53, %v1037_v49  ;;  %612 = vrot.lane.b32.xlu1 %v3048_v63, %s2632_s24  ;;  %v3149_v53 = vld [vmem:[#allocation2 + $0xa8] sm:$0xff] }
  0xcf   : > { %546 = vrot.lane.b32.xlu0 %v2870_v37, %s2631_s0 }
  0xd0   : > { %v995_v32 = vpop.permute.xlu1 %994 }
  0xd1   : > { %v1087_v62 = vpop.permute.xlu0 %1086  ;;  %v1133_v7 = vsel %vm398_vm0, %v2868_v36, %v995_v32  ;;  %v3153_v32 = vld [vmem:[#allocation2 + $0xb0] sm:$0xff] }
  0xd2   : > { %v3054_v31 = vsel %vm729_vm3, %v1146_v58, %v1087_v62  ;;  %662 = vrot.lane.b32.xlu1 %v2880_v40, %s2634_s28 }
  0xd3   : > { %2365 = vmatprep.mubr.msk.f32.mxu1 %vm754_vm4, %v3054_v31  ;;  %610 = vrot.lane.b32.xlu0 %v3044_v54, %s2632_s24 }
  0xd4   : > { %2366 = vmatmul.mubr.msk.f32.gmra.mrb[4].mxu1 %vm754_vm4, %v3051_v0  ;;  %v1043_v2 = vpop.permute.xlu1 %1042 }
  0xd5   : > { %v993_v1 = vpop.permute.xlu0 %992  ;;  %v1149_v11 = vsel %vm712_vm2, %v1133_v7, %v1043_v2 }
  0xd6   : > { %v1132_v8 = vsel %vm398_vm0, %v2870_v37, %v993_v1  ;;  %552 = vrot.lane.b32.xlu1 %v2880_v40, %s2631_s0 }
  0xd7   : > { %660 = vrot.lane.b32.xlu0 %v2882_v41, %s2634_s28 }
  0xd8   : > { %v1093_v13 = vpop.permute.xlu1 %1092 }
  0xd9   : > { %v1041_v3 = vpop.permute.xlu0 %1040  ;;  %v3083_v18 = vsel %vm729_vm3, %v1149_v11, %v1093_v13 }
  0xda   : > { %v1148_v12 = vsel %vm712_vm2, %v1132_v8, %v1041_v3  ;;  %616 = vrot.lane.b32.xlu1 %v3080_v16, %s2632_s24 }
  0xdb   : > { %550 = vrot.lane.b32.xlu0 %v2882_v41, %s2631_s0 }
  0xdc   : > { %v999_v37 = vpop.permute.xlu1 %998 }
  0xdd   : > { %v1091_v14 = vpop.permute.xlu0 %1090  ;;  %v1135_v27 = vsel %vm398_vm0, %v2880_v40, %v999_v37 }
  0xde   : > { %v3086_v36 = vsel %vm729_vm3, %v1148_v12, %v1091_v14  ;;  %666 = vrot.lane.b32.xlu1 %v2892_v44, %s2634_s28  ;;  %v3181_v12 = vld [vmem:[#allocation2 + $0xc0] sm:$0xff] }
  0xdf   : > { %2368 = vmatprep.mubr.msk.f32.mxu1 %vm754_vm4, %v3086_v36  ;;  %614 = vrot.lane.b32.xlu0 %v3076_v9, %s2632_s24 }
  0xe0   : > { %2369 = vmatmul.mubr.msk.f32.gmra.mrb[6].mxu1 %vm754_vm4, %v3083_v18  ;;  %v1047_v20 = vpop.permute.xlu1 %1046 }
  0xe1   : > { %v997_v19 = vpop.permute.xlu0 %996  ;;  %v1151_v30 = vsel %vm712_vm2, %v1135_v27, %v1047_v20  ;;  %v3185_v20 = vld [vmem:[#allocation2 + $0xc8] sm:$0xff] }
  0xe2   : > { %v1134_v28 = vsel %vm398_vm0, %v2882_v41, %v997_v19  ;;  %556 = vrot.lane.b32.xlu1 %v2892_v44, %s2631_s0 }
  0xe3   : > { %664 = vrot.lane.b32.xlu0 %v2894_v45, %s2634_s28 }
  0xe4   : > { %v1097_v35 = vpop.permute.xlu1 %1096 }
  0xe5   : > { %v1045_v21 = vpop.permute.xlu0 %1044  ;;  %v3124_v40 = vsel %vm729_vm3, %v1151_v30, %v1097_v35 }
  0xe6   : > { %v1150_v33 = vsel %vm712_vm2, %v1134_v28, %v1045_v21  ;;  %620 = vrot.lane.b32.xlu1 %v3120_v39, %s2632_s24 }
  0xe7   : > { %554 = vrot.lane.b32.xlu0 %v2894_v45, %s2631_s0 }
  0xe8   : > { %v1003_v42 = vpop.permute.xlu1 %1002 }
  0xe9   : > { %v1095_v38 = vpop.permute.xlu0 %1094  ;;  %v1137_v49 = vsel %vm398_vm0, %v2892_v44, %v1003_v42 }
  0xea   : > { %v3127_v41 = vsel %vm729_vm3, %v1150_v33, %v1095_v38  ;;  %670 = vrot.lane.b32.xlu1 %v2913_v51, %s2634_s28  ;;  %v475_v33 = vld [vmem:[#allocation2 + $0xd8] sm:$0xff] }
  0xeb   : > { %2371 = vmatprep.mubr.msk.f32.mxu1 %vm754_vm4, %v3127_v41  ;;  %618 = vrot.lane.b32.xlu0 %v3116_v29, %s2632_s24 }
  0xec   : > { %2372 = vmatmul.mubr.msk.f32.gmra.mrb[8].mxu1 %vm754_vm4, %v3124_v40  ;;  %v1051_v25 = vpop.permute.xlu1 %1050 }
  0xed   : > { %v1001_v23 = vpop.permute.xlu0 %1000  ;;  %v1153_v57 = vsel %vm712_vm2, %v1137_v49, %v1051_v25  ;;  %v476_v25 = vld [vmem:[#allocation2 + $0xe0] sm:$0xff] }
  0xee   : > { %v1136_v50 = vsel %vm398_vm0, %v2894_v45, %v1001_v23  ;;  %560 = vrot.lane.b32.xlu1 %v2913_v51, %s2631_s0 }
  0xef   : > { %668 = vrot.lane.b32.xlu0 %v2915_v52, %s2634_s28 }
  0xf0   : > { %v1101_v61 = vpop.permute.xlu1 %1100 }
  0xf1   : > { %v1049_v48 = vpop.permute.xlu0 %1048  ;;  %v3156_v1 = vsel %vm729_vm3, %v1153_v57, %v1101_v61  ;;  %v458_v61 = vld [vmem:[#allocation2 + $0x8] sm:$0xff] }
  0xf2   : > { %v1152_v58 = vsel %vm712_vm2, %v1136_v50, %v1049_v48  ;;  %624 = vrot.lane.b32.xlu1 %v3153_v32, %s2632_s24  ;;  %v457_v50 = vld [vmem:[#allocation2] sm:$0xff] }
  0xf3   : > { %558 = vrot.lane.b32.xlu0 %v2915_v52, %s2631_s0 }
  0xf4   : > { %v1007_v45 = vpop.permute.xlu1 %1006 }
  0xf5   : > { %v1099_v62 = vpop.permute.xlu0 %1098  ;;  %v1139_v8 = vsel %vm398_vm0, %v2913_v51, %v1007_v45 }
  0xf6   : > { %v3159_v44 = vsel %vm729_vm3, %v1152_v58, %v1099_v62  ;;  %674 = vrot.lane.b32.xlu1 %v2925_v55, %s2634_s28 }
  0xf7   : > { %2374 = vmatprep.mubr.msk.f32.mxu1 %vm754_vm4, %v3159_v44  ;;  %622 = vrot.lane.b32.xlu0 %v3149_v53, %s2632_s24 }
  0xf8   : > { %2375 = vmatmul.mubr.msk.f32.gmra.mrb[10].mxu1 %vm754_vm4, %v3156_v1  ;;  %v1055_v3 = vpop.permute.xlu1 %1054 }
  0xf9   : > { %v1005_v2 = vpop.permute.xlu0 %1004  ;;  %v1155_v13 = vsel %vm712_vm2, %v1139_v8, %v1055_v3 }
  0xfa   : > { %v1138_v11 = vsel %vm398_vm0, %v2915_v52, %v1005_v2  ;;  %564 = vrot.lane.b32.xlu1 %v2925_v55, %s2631_s0 }
  0xfb   : > { %672 = vrot.lane.b32.xlu0 %v2927_v56, %s2634_s28 }
  0xfc   : > { %v1105_v37 = vpop.permute.xlu1 %1104 }
  0xfd   : > { %v1053_v7 = vpop.permute.xlu0 %1052  ;;  %v3188_v21 = vsel %vm729_vm3, %v1155_v13, %v1105_v37 }
  0xfe   : > { %v1154_v14 = vsel %vm712_vm2, %v1138_v11, %v1053_v7  ;;  %628 = vrot.lane.b32.xlu1 %v3185_v20, %s2632_s24 }
  0xff   : > { %562 = vrot.lane.b32.xlu0 %v2927_v56, %s2631_s0 }
 0x100   : > { %v1011_v52 = vpop.permute.xlu1 %1010 }
 0x101   : > { %v1103_v19 = vpop.permute.xlu0 %1102  ;;  %v1141_v28 = vsel %vm398_vm0, %v2925_v55, %v1011_v52 }
 0x102   : > { %v1170_v51 = vsel %vm729_vm3, %v1154_v14, %v1103_v19  ;;  %678 = vrot.lane.b32.xlu1 %v2937_v59, %s2634_s28 }
 0x103   : > { %2377 = vmatprep.mubr.msk.f32.mxu1 %vm754_vm4, %v1170_v51  ;;  %626 = vrot.lane.b32.xlu0 %v3181_v12, %s2632_s24 }
 0x104   : > { %2378 = vmatmul.mubr.msk.f32.gmra.mrb[12].mxu1 %vm754_vm4, %v3188_v21  ;;  %v1059_v24 = vpop.permute.xlu1 %1058 }
 0x105   : > { %v1009_v22 = vpop.permute.xlu0 %1008  ;;  %v1157_v35 = vsel %vm712_vm2, %v1141_v28, %v1059_v24 }
 0x106   : > { %v1140_v30 = vsel %vm398_vm0, %v2927_v56, %v1009_v22  ;;  %1484 = vrot.lane.b32.xlu1 %v2937_v59, %s2631_s0 }
 0x107   : > { %676 = vrot.lane.b32.xlu0 %v2939_v60, %s2634_s28 }
 0x108   : > { %v1109_v42 = vpop.permute.xlu1 %1108 }
 0x109   : > { %v1057_v27 = vpop.permute.xlu0 %1056  ;;  %v1173_v48 = vsel %vm729_vm3, %v1157_v35, %v1109_v42 }
 0x10a   : > { %v1156_v38 = vsel %vm712_vm2, %v1140_v30, %v1057_v27  ;;  %1492 = vrot.lane.b32.xlu1 %v476_v25, %s2632_s24 }
 0x10b   : > { %1482 = vrot.lane.b32.xlu0 %v2939_v60, %s2631_s0 }
 0x10c   : > { %v537_v55 = vpop.permute.xlu1 %536 }
 0x10d   : > { %v1107_v23 = vpop.permute.xlu0 %1106 }
 0x10e   : > { %v1172_v49 = vsel %vm729_vm3, %v1156_v38, %v1107_v23  ;;  %1500 = vrot.lane.b32.xlu1 %v2975_v10, %s2634_s28  ;;  %v697_v10 = vsel %vm398_vm0, %v458_v61, %v537_v55 }
 0x10f   : > { %2380 = vmatprep.mubr.msk.f32.mxu1 %vm754_vm4, %v1172_v49  ;;  %1490 = vrot.lane.b32.xlu0 %v475_v33, %s2632_s24 }
 0x110   : > { %2381 = vmatmul.mubr.msk.f32.gmra.mrb[14].mxu1 %vm754_vm4, %v1173_v48  ;;  %v601_v57 = vpop.permute.xlu1 %600 }
 0x111   : > { %2415 = vmatprep.mubr.msk.f32.mxu1 %vm754_vm4, %v3022_v47  ;;  %v535_v56 = vpop.permute.xlu0 %534 }
 0x112   : > { %v696_v62 = vsel %vm398_vm0, %v457_v50, %v535_v56 }
 0x113   : > { %1498 = vrot.lane.b32.xlu0 %v2969_v6, %s2634_s28 }
 0x114   : > { %2416 = vmatmul.mubr.msk.f32.vlgmr.msra.gmra.mrb[16].mxu1 %vm754_vm4, %v3019_v46  ;;  %v1681_v47 = vpop.permute.xlu1 %1680 }
 0x115   : > { %2418 = vmatprep.mubr.msk.f32.mxu1 %vm754_vm4, %v3054_v31  ;;  %v599_v58 = vpop.permute.xlu0 %598  ;;  %v714_v31 = vsel %vm712_vm2, %v697_v10, %v601_v57  ;;  %v1700_v8 = vsel %vm398_vm0, %v2939_v60, %v1681_v47 }
 0x116   : > { %v713_v6 = vsel %vm712_vm2, %v696_v62, %v599_v58 }
 0x118   : > { %2419 = vmatmul.mubr.msk.f32.gmra.mrb[18].mxu1 %vm754_vm4, %v3051_v0  ;;  %v1683_v2 = vpop.permute.xlu1 %1682 }
 0x119   : > { %2421 = vmatprep.mubr.msk.f32.mxu1 %vm754_vm4, %v3086_v36  ;;  %v649_v46 = vpop.permute.xlu0 %648 }
 0x11a   : > { %v730_v45 = vsel %vm729_vm3, %v713_v6, %v649_v46 }
 0x11b   : > { %2331 = vmatprep.mubr.msk.f32.mxu0 %vm754_vm4, %v730_v45 }
 0x11c   : > { %2422 = vmatmul.mubr.msk.f32.gmra.mrb[20].mxu1 %vm754_vm4, %v3083_v18  ;;  %v539_v36 = vpop.permute.xlu1 %538 }
 0x11d   : > { %2424 = vmatprep.mubr.msk.f32.mxu1 %vm754_vm4, %v3127_v41  ;;  %v651_v0 = vpop.permute.xlu0 %650  ;;  %v698_v37 = vsel %vm398_vm0, %v2957_v5, %v539_v36 }
 0x11e   : > { %v731_v3 = vsel %vm729_vm3, %v714_v31, %v651_v0 }
 0x11f   : > { %2332 = vmatmul.mubr.msk.f32.vlgmr.msra.gmra.mrb[0].mxu0 %vm754_vm4, %v731_v3 }
 0x120   : > { %2425 = vmatmul.mubr.msk.f32.gmra.mrb[22].mxu1 %vm754_vm4, %v3124_v40  ;;  %2450 = vmatpush3.bf16.msra.mxu0 %v3108_v26  ;;  %v1695_v7 = vpop.permute.xlu1 %1694 }
 0x121   : > { %2427 = vmatprep.mubr.msk.f32.mxu1 %vm754_vm4, %v3159_v44  ;;  %v1687_v18 = vpop.permute.xlu0 %1686  ;;  %v1701_v44 = vsel %vm398_vm0, %v2937_v59, %v1683_v2 }
 0x122   : > { %v1702_v11 = vsel %vm712_vm2, %v1700_v8, %v1687_v18 }
 0x124   : > { %2428 = vmatmul.mubr.msk.f32.gmra.mrb[24].mxu1 %vm754_vm4, %v3156_v1  ;;  %v603_v26 = vpop.permute.xlu1 %602  ;;  %v1704_v1 = vsel %vm729_vm3, %v1702_v11, %v1695_v7 }
 0x125   : > { %2430 = vmatprep.mubr.msk.f32.mxu1 %vm754_vm4, %v1170_v51  ;;  %v1689_v41 = vpop.permute.xlu0 %1688 }
 0x126   : > { %v1703_v13 = vsel %vm712_vm2, %v1701_v44, %v1689_v41 }
 0x128   : > { %2431 = vmatmul.mubr.msk.f32.gmra.mrb[26].mxu1 %vm754_vm4, %v3188_v21  ;;  %v605_v14 = vpop.permute.xlu1 %604  ;;  %v715_v21 = vsel %vm712_vm2, %v698_v37, %v603_v26 }
 0x129   : > { %2433 = vmatprep.mubr.msk.f32.mxu1 %vm754_vm4, %v1172_v49  ;;  %v541_v40 = vpop.permute.xlu0 %540 }
 0x12a   : > { %v699_v59 = vsel %vm398_vm0, %v2955_v4, %v541_v40 }
 0x12b   : > { %v716_v51 = vsel %vm712_vm2, %v699_v59, %v605_v14 }
 0x12c   : > { %2434 = vmatmul.mubr.msk.f32.gmra.mrb[28].mxu1 %vm754_vm4, %v1173_v48  ;;  %v655_v52 = vpop.permute.xlu1 %654 }
 0x12d   : > { %2436 = vmatprep.mubr.msk.f32.mxu1 %vm754_vm4, %v1704_v1  ;;  %v1697_v60 = vpop.permute.xlu0 %1696  ;;  %v3273_v24 = vsel %vm729_vm3, %v716_v51, %v655_v52 }
 0x12e   : > { %v1705_v19 = vsel %vm729_vm3, %v1703_v13, %v1697_v60 }
 0x130   : > { %2437 = vmatmul.mubr.msk.f32.gmra.mrb[30].mxu1 %vm754_vm4, %v1705_v19  ;;  %v545_v5 = vpop.permute.xlu1 %544 }
 0x131   : > { %v653_v22 = vpop.permute.xlu0 %652  ;;  %v701_v30 = vsel %vm398_vm0, %v2990_v17, %v545_v5 }
 0x132   : > { %v3276_v27 = vsel %vm729_vm3, %v715_v21, %v653_v22 }
 0x133   : > { %2334 = vmatprep.mubr.msk.f32.mxu0 %vm754_vm4, %v3276_v27 }
 0x134   : > { %2335 = vmatmul.mubr.msk.f32.gmra.mrb[2].mxu0 %vm754_vm4, %v3273_v24  ;;  %v609_v35 = vpop.permute.xlu1 %608 }
 0x135   : > { %v543_v4 = vpop.permute.xlu0 %542  ;;  %v718_v42 = vsel %vm712_vm2, %v701_v30, %v609_v35 }
 0x136   : > { %v700_v28 = vsel %vm398_vm0, %v2982_v15, %v543_v4 }
 0x138   : > { %v659_v48 = vpop.permute.xlu1 %658 }
 0x139   : > { %v607_v33 = vpop.permute.xlu0 %606  ;;  %v3292_v49 = vsel %vm729_vm3, %v718_v42, %v659_v48 }
 0x13a   : > { %v717_v38 = vsel %vm712_vm2, %v700_v28, %v607_v33 }
 0x13c   : > { %v549_v17 = vpop.permute.xlu1 %548 }
 0x13d   : > { %v657_v23 = vpop.permute.xlu0 %656  ;;  %v703_v56 = vsel %vm398_vm0, %v3016_v43, %v549_v17 }
 0x13e   : > { %v3289_v25 = vsel %vm729_vm3, %v717_v38, %v657_v23 }
 0x13f   : > { %2337 = vmatprep.mubr.msk.f32.mxu0 %vm754_vm4, %v3289_v25 }
 0x140   : > { %2338 = vmatmul.mubr.msk.f32.gmra.mrb[4].mxu0 %vm754_vm4, %v3292_v49  ;;  %v613_v57 = vpop.permute.xlu1 %612 }
 0x141   : > { %v547_v15 = vpop.permute.xlu0 %546  ;;  %v720_v61 = vsel %vm712_vm2, %v703_v56, %v613_v57 }
 0x142   : > { %v702_v55 = vsel %vm398_vm0, %v3012_v34, %v547_v15 }
 0x144   : > { %v663_v47 = vpop.permute.xlu1 %662 }
 0x145   : > { %v611_v50 = vpop.permute.xlu0 %610  ;;  %v3308_v46 = vsel %vm729_vm3, %v720_v61, %v663_v47 }
 0x146   : > { %v719_v58 = vsel %vm712_vm2, %v702_v55, %v611_v50 }
 0x148   : > { %v553_v43 = vpop.permute.xlu1 %552 }
 0x149   : > { %v661_v62 = vpop.permute.xlu0 %660  ;;  %v705_v45 = vsel %vm398_vm0, %v3048_v63, %v553_v43 }
 0x14a   : > { %v3305_v6 = vsel %vm729_vm3, %v719_v58, %v661_v62 }
 0x14b   : > { %2340 = vmatprep.mubr.msk.f32.mxu0 %vm754_vm4, %v3305_v6 }
 0x14c   : > { %2341 = vmatmul.mubr.msk.f32.gmra.mrb[6].mxu0 %vm754_vm4, %v3308_v46  ;;  %v617_v2 = vpop.permute.xlu1 %616 }
 0x14d   : > { %v551_v34 = vpop.permute.xlu0 %550  ;;  %v722_v3 = vsel %vm712_vm2, %v705_v45, %v617_v2 }
 0x14e   : > { %v704_v10 = vsel %vm398_vm0, %v3044_v54, %v551_v34 }
 0x150   : > { %v667_v7 = vpop.permute.xlu1 %666 }
 0x151   : > { %v615_v31 = vpop.permute.xlu0 %614  ;;  %v739_v41 = vsel %vm729_vm3, %v722_v3, %v667_v7 }
 0x152   : > { %v721_v0 = vsel %vm712_vm2, %v704_v10, %v615_v31 }
 0x154   : > { %v557_v8 = vpop.permute.xlu1 %556 }
 0x155   : > { %v665_v36 = vpop.permute.xlu0 %664  ;;  %v707_v26 = vsel %vm398_vm0, %v3080_v16, %v557_v8 }
 0x156   : > { %v738_v18 = vsel %vm729_vm3, %v721_v0, %v665_v36 }
 0x157   : > { %2343 = vmatprep.mubr.msk.f32.mxu0 %vm754_vm4, %v738_v18 }
 0x158   : > { %2344 = vmatmul.mubr.msk.f32.gmra.mrb[8].mxu0 %vm754_vm4, %v739_v41  ;;  %v621_v44 = vpop.permute.xlu1 %620 }
 0x159   : > { %v555_v54 = vpop.permute.xlu0 %554  ;;  %v724_v1 = vsel %vm712_vm2, %v707_v26, %v621_v44 }
 0x15a   : > { %v706_v63 = vsel %vm398_vm0, %v3076_v9, %v555_v54 }
 0x15c   : > { %v671_v60 = vpop.permute.xlu1 %670 }
 0x15d   : > { %v619_v40 = vpop.permute.xlu0 %618  ;;  %v741_v37 = vsel %vm729_vm3, %v724_v1, %v671_v60 }
 0x15e   : > { %v723_v11 = vsel %vm712_vm2, %v706_v63, %v619_v40 }
 0x160   : > { %v561_v19 = vpop.permute.xlu1 %560 }
 0x161   : > { %v669_v13 = vpop.permute.xlu0 %668  ;;  %v709_v59 = vsel %vm398_vm0, %v3120_v39, %v561_v19 }
 0x162   : > { %v740_v14 = vsel %vm729_vm3, %v723_v11, %v669_v13 }
 0x163   : > { %2346 = vmatprep.mubr.msk.f32.mxu0 %vm754_vm4, %v740_v14 }
 0x164   : > { %2347 = vmatmul.mubr.msk.f32.gmra.mrb[10].mxu0 %vm754_vm4, %v741_v37  ;;  %v625_v51 = vpop.permute.xlu1 %624 }
 0x165   : > { %v559_v9 = vpop.permute.xlu0 %558  ;;  %v726_v22 = vsel %vm712_vm2, %v709_v59, %v625_v51 }
 0x166   : > { %v708_v16 = vsel %vm398_vm0, %v3116_v29, %v559_v9 }
 0x168   : > { %v675_v28 = vpop.permute.xlu1 %674 }
 0x169   : > { %v623_v21 = vpop.permute.xlu0 %622  ;;  %v743_v30 = vsel %vm729_vm3, %v726_v22, %v675_v28 }
 0x16a   : > { %v725_v52 = vsel %vm712_vm2, %v708_v16, %v623_v21 }
 0x16c   : > { %v565_v33 = vpop.permute.xlu1 %564 }
 0x16d   : > { %v673_v4 = vpop.permute.xlu0 %672  ;;  %v711_v35 = vsel %vm398_vm0, %v3153_v32, %v565_v33 }
 0x16e   : > { %v742_v5 = vsel %vm729_vm3, %v725_v52, %v673_v4 }
 0x16f   : > { %2349 = vmatprep.mubr.msk.f32.mxu0 %vm754_vm4, %v742_v5 }
 0x170   : > { %2350 = vmatmul.mubr.msk.f32.gmra.mrb[12].mxu0 %vm754_vm4, %v743_v30  ;;  %v629_v42 = vpop.permute.xlu1 %628 }
 0x171   : > { %v563_v29 = vpop.permute.xlu0 %562  ;;  %v728_v48 = vsel %vm712_vm2, %v711_v35, %v629_v42 }
 0x172   : > { %v710_v39 = vsel %vm398_vm0, %v3149_v53, %v563_v29 }
 0x174   : > { %v679_v55 = vpop.permute.xlu1 %678 }
 0x175   : > { %v627_v38 = vpop.permute.xlu0 %626  ;;  %v745_v56 = vsel %vm729_vm3, %v728_v48, %v679_v55 }
 0x176   : > { %v727_v23 = vsel %vm712_vm2, %v710_v39, %v627_v38 }
 0x178   : > { %v1485_v32 = vpop.permute.xlu1 %1484 }
 0x179   : > { %v677_v15 = vpop.permute.xlu0 %676 }
 0x17a   : > { %v744_v17 = vsel %vm729_vm3, %v727_v23, %v677_v15 }
 0x17b   : > { %2352 = vmatprep.mubr.msk.f32.mxu0 %vm754_vm4, %v744_v17 }
 0x17c   : > { %2353 = vmatmul.mubr.msk.f32.gmra.mrb[14].mxu0 %vm754_vm4, %v745_v56  ;;  %v1493_v50 = vpop.permute.xlu1 %1492 }
 0x17d   : > { %2387 = vmatprep.mubr.msk.f32.mxu0 %vm754_vm4, %v3276_v27  ;;  %v1483_v53 = vpop.permute.xlu0 %1482  ;;  %v3372_v27 = vld [vmem:[%s3650_s4] ss:$0 sm:$0xff] }
 0x180   : > { %2388 = vmatmul.mubr.msk.f32.vlgmr.msra.gmra.mrb[16].mxu0 %vm754_vm4, %v3273_v24  ;;  %v1501_v10 = vpop.permute.xlu1 %1500 }
 0x181   : > { %2390 = vmatprep.mubr.msk.f32.mxu0 %vm754_vm4, %v3289_v25  ;;  %v1491_v24 = vpop.permute.xlu0 %1490 }
 0x184   : > { %2391 = vmatmul.mubr.msk.f32.gmra.mrb[18].mxu0 %vm754_vm4, %v3292_v49  ;;  %v1504_v49 = vsel %vm398_vm0, %v3181_v12, %v1483_v53 }
 0x185   : > { %2393 = vmatprep.mubr.msk.f32.mxu0 %vm754_vm4, %v3305_v6  ;;  %v1505_v6 = vsel %vm398_vm0, %v3185_v20, %v1485_v32  ;;  %v1506_v47 = vsel %vm712_vm2, %v1504_v49, %v1491_v24 }
 0x186   : > { %v1507_v12 = vsel %vm712_vm2, %v1505_v6, %v1493_v50 }
 0x187   : > { %v1509_v20 = vsel %vm729_vm3, %v1507_v12, %v1501_v10 }
 0x188   : > { %2394 = vmatmul.mubr.msk.f32.gmra.mrb[20].mxu0 %vm754_vm4, %v3308_v46  ;;  %v1499_v46 = vpop.permute.xlu0 %1498 }
 0x189   : > { %2396 = vmatprep.mubr.msk.f32.mxu0 %vm754_vm4, %v738_v18  ;;  %v1508_v43 = vsel %vm729_vm3, %v1506_v47, %v1499_v46 }
 0x18c   : > { %2397 = vmatmul.mubr.msk.f32.gmra.mrb[22].mxu0 %vm754_vm4, %v739_v41 }
 0x18d   : > { %2399 = vmatprep.mubr.msk.f32.mxu0 %vm754_vm4, %v740_v14 }
 0x190   : > { %v2361_v25 = vpop.f32.mrb[0].mxu1  ;;  %2400 = vmatmul.mubr.msk.f32.gmra.mrb[24].mxu0 %vm754_vm4, %v741_v37 }
 0x191   : > { %v1297_v57 = vadd.f32 %v2361_v25, %v3372_v27  ;;  %v1291_v58 = vpop.f32.mrb[1].mxu1  ;;  %2402 = vmatprep.mubr.msk.f32.mxu0 %vm754_vm4, %v742_v5 }
 0x192   : > { %v1292_v61 = vadd.f32 %v3372_v27, %v1291_v58 }
 0x193   : > { %v1371_v62 = vmax.f32 %v1297_v57, 0.0 }
 0x194   : > { %v1370_v34 = vmax.f32 %v1292_v61, 0.0  ;;  %2403 = vmatmul.mubr.msk.f32.gmra.mrb[26].mxu0 %vm754_vm4, %v743_v30 }
 0x195   : > { %1404 = vrot.lane.b32.xlu1 %v1371_v62, %s2632_s24  ;;  %2405 = vmatprep.mubr.msk.f32.mxu0 %vm754_vm4, %v744_v17 }
 0x196   : > { %1402 = vrot.lane.b32.xlu0 %v1370_v34, %s2632_s24 }
 0x198   : > { %2406 = vmatmul.mubr.msk.f32.gmra.mrb[28].mxu0 %vm754_vm4, %v745_v56 }
 0x199   : > { %2408 = vmatprep.mubr.msk.f32.mxu0 %vm754_vm4, %v1508_v43 }
 0x19b   : > { %v2364_v45 = vpop.f32.mrb[2].mxu1 }
 0x19c   : > { %v1307_v31 = vadd.f32 %v2364_v45, %v3372_v27  ;;  %v1301_v2 = vpop.f32.mrb[3].mxu1  ;;  %2409 = vmatmul.mubr.msk.f32.gmra.mrb[30].mxu0 %vm754_vm4, %v1509_v20 }
 0x19d   : > { %v1302_v0 = vadd.f32 %v3372_v27, %v1301_v2 }
 0x19e   : > { %v1373_v3 = vmax.f32 %v1307_v31, 0.0 }
 0x19f   : > { %v1372_v36 = vmax.f32 %v1302_v0, 0.0 }
 0x1a0   : > { %1408 = vrot.lane.b32.xlu1 %v1373_v3, %s2632_s24 }
 0x1a1   : > { %1406 = vrot.lane.b32.xlu0 %v1372_v36, %s2632_s24 }
 0x1a7   : > { %v2367_v18 = vpop.f32.mrb[4].mxu1 }
 0x1a8   : > { %v1317_v7 = vadd.f32 %v2367_v18, %v3372_v27  ;;  %v1311_v41 = vpop.f32.mrb[5].mxu1 }
 0x1a9   : > { %v1312_v54 = vadd.f32 %v3372_v27, %v1311_v41 }
 0x1aa   : > { %v1375_v8 = vmax.f32 %v1317_v7, 0.0 }
 0x1ab   : > { %v1374_v63 = vmax.f32 %v1312_v54, 0.0 }
 0x1ac   : > { %1412 = vrot.lane.b32.xlu1 %v1375_v8, %s2632_s24 }
 0x1ad   : > { %1410 = vrot.lane.b32.xlu0 %v1374_v63, %s2632_s24 }
 0x1b3   : > { %v2370_v26 = vpop.f32.mrb[6].mxu1 }
 0x1b4   : > { %v1327_v40 = vadd.f32 %v2370_v26, %v3372_v27  ;;  %v1321_v44 = vpop.f32.mrb[7].mxu1 }
 0x1b5   : > { %v1322_v11 = vadd.f32 %v3372_v27, %v1321_v44 }
 0x1b6   : > { %v1377_v1 = vmax.f32 %v1327_v40, 0.0 }
 0x1b7   : > { %v1376_v13 = vmax.f32 %v1322_v11, 0.0 }
 0x1b8   : > { %1416 = vrot.lane.b32.xlu1 %v1377_v1, %s2632_s24 }
 0x1b9   : > { %1414 = vrot.lane.b32.xlu0 %v1376_v13, %s2632_s24 }
 0x1bf   : > { %v2373_v14 = vpop.f32.mrb[8].mxu1 }
 0x1c0   : > { %v1337_v60 = vadd.f32 %v2373_v14, %v3372_v27  ;;  %v1331_v37 = vpop.f32.mrb[9].mxu1 }
 0x1c1   : > { %v1332_v9 = vadd.f32 %v3372_v27, %v1331_v37 }
 0x1c2   : > { %v1379_v19 = vmax.f32 %v1337_v60, 0.0 }
 0x1c3   : > { %v1378_v16 = vmax.f32 %v1332_v9, 0.0 }
 0x1c4   : > { %1420 = vrot.lane.b32.xlu1 %v1379_v19, %s2632_s24 }
 0x1c5   : > { %1418 = vrot.lane.b32.xlu0 %v1378_v16, %s2632_s24 }
 0x1cb   : > { %v2376_v59 = vpop.f32.mrb[10].mxu1 }
 0x1cc   : > { %v1347_v21 = vadd.f32 %v2376_v59, %v3372_v27  ;;  %v1341_v51 = vpop.f32.mrb[11].mxu1 }
 0x1cd   : > { %v1342_v52 = vadd.f32 %v3372_v27, %v1341_v51 }
 0x1ce   : > { %v1381_v22 = vmax.f32 %v1347_v21, 0.0 }
 0x1cf   : > { %v1380_v4 = vmax.f32 %v1342_v52, 0.0 }
 0x1d0   : > { %1424 = vrot.lane.b32.xlu1 %v1381_v22, %s2632_s24 }
 0x1d1   : > { %1422 = vrot.lane.b32.xlu0 %v1380_v4, %s2632_s24 }
 0x1d7   : > { %v2379_v5 = vpop.f32.mrb[12].mxu1 }
 0x1d8   : > { %v1357_v28 = vadd.f32 %v2379_v5, %v3372_v27  ;;  %v1351_v30 = vpop.f32.mrb[13].mxu1 }
 0x1d9   : > { %v1352_v29 = vadd.f32 %v3372_v27, %v1351_v30 }
 0x1da   : > { %v1383_v33 = vmax.f32 %v1357_v28, 0.0 }
 0x1db   : > { %v1382_v39 = vmax.f32 %v1352_v29, 0.0 }
 0x1dc   : > { %1428 = vrot.lane.b32.xlu1 %v1383_v33, %s2632_s24 }
 0x1dd   : > { %1426 = vrot.lane.b32.xlu0 %v1382_v39, %s2632_s24 }
 0x1e3   : > { %v2382_v35 = vpop.f32.mrb[14].mxu1 }
 0x1e4   : > { %v1367_v38 = vadd.f32 %v2382_v35, %v3372_v27  ;;  %v1361_v42 = vpop.f32.mrb[15].mxu1 }
 0x1e5   : > { %v1362_v23 = vadd.f32 %v3372_v27, %v1361_v42 }
 0x1e6   : > { %v1385_v48 = vmax.f32 %v1367_v38, 0.0 }
 0x1e7   : > { %v1384_v15 = vmax.f32 %v1362_v23, 0.0  ;;  %v2417_v17 = vpop.f32.mrb[16].mxu1 }
 0x1e8   : > { %v1787_v55 = vadd.f32 %v2417_v17, %v3372_v27  ;;  %v1781_v56 = vpop.f32.mrb[17].mxu1  ;;  %1432 = vrot.lane.b32.xlu1 %v1385_v48, %s2632_s24 }
 0x1e9   : > { %v1782_v53 = vadd.f32 %v3372_v27, %v1781_v56  ;;  %1430 = vrot.lane.b32.xlu0 %v1384_v15, %s2632_s24 }
 0x1ea   : > { %v1861_v32 = vmax.f32 %v1787_v55, 0.0 }
 0x1eb   : > { %v1860_v24 = vmax.f32 %v1782_v53, 0.0  ;;  %v2420_v25 = vpop.f32.mrb[18].mxu1 }
 0x1ec   : > { %v1797_v49 = vadd.f32 %v2420_v25, %v3372_v27  ;;  %v1791_v50 = vpop.f32.mrb[19].mxu1  ;;  %1894 = vrot.lane.b32.xlu1 %v1861_v32, %s2632_s24 }
 0x1ed   : > { %v1792_v57 = vadd.f32 %v3372_v27, %v1791_v50  ;;  %1892 = vrot.lane.b32.xlu0 %v1860_v24, %s2632_s24 }
 0x1ee   : > { %v1863_v58 = vmax.f32 %v1797_v49, 0.0 }
 0x1ef   : > { %v1862_v61 = vmax.f32 %v1792_v57, 0.0  ;;  %v2423_v62 = vpop.f32.mrb[20].mxu1 }
 0x1f0   : > { %v1807_v6 = vadd.f32 %v2423_v62, %v3372_v27  ;;  %v1801_v47 = vpop.f32.mrb[21].mxu1  ;;  %1898 = vrot.lane.b32.xlu1 %v1863_v58, %s2632_s24 }
 0x1f1   : > { %v1802_v46 = vadd.f32 %v3372_v27, %v1801_v47  ;;  %1896 = vrot.lane.b32.xlu0 %v1862_v61, %s2632_s24 }
 0x1f2   : > { %v1865_v34 = vmax.f32 %v1807_v6, 0.0  ;;  %v2333_v12 = vpop.f32.mrb[0].mxu0 }
 0x1f3   : > { %v1864_v43 = vmax.f32 %v1802_v46, 0.0  ;;  %v869_v10 = vpop.f32.mrb[1].mxu0  ;;  %v2426_v20 = vpop.f32.mrb[22].mxu1  ;;  %v875_v9 = vadd.f32 %v2333_v12, %v3372_v27 }
 0x1f4   : > { %v1817_v45 = vadd.f32 %v2426_v20, %v3372_v27  ;;  %v1811_v31 = vpop.f32.mrb[23].mxu1  ;;  %1902 = vrot.lane.b32.xlu1 %v1865_v34, %s2632_s24  ;;  %v870_v16 = vadd.f32 %v3372_v27, %v869_v10 }
 0x1f5   : > { %v1812_v2 = vadd.f32 %v3372_v27, %v1811_v31  ;;  %1900 = vrot.lane.b32.xlu0 %v1864_v43, %s2632_s24  ;;  %v949_v4 = vmax.f32 %v875_v9, 0.0 }
 0x1f6   : > { %v1867_v0 = vmax.f32 %v1817_v45, 0.0  ;;  %v948_v28 = vmax.f32 %v870_v16, 0.0 }
 0x1f7   : > { %v1866_v3 = vmax.f32 %v1812_v2, 0.0  ;;  %v2429_v36 = vpop.f32.mrb[24].mxu1 }
 0x1f8   : > { %v1827_v18 = vadd.f32 %v2429_v36, %v3372_v27  ;;  %v1821_v7 = vpop.f32.mrb[25].mxu1  ;;  %1906 = vrot.lane.b32.xlu1 %v1867_v0, %s2632_s24 }
 0x1f9   : > { %v1822_v41 = vadd.f32 %v3372_v27, %v1821_v7  ;;  %1904 = vrot.lane.b32.xlu0 %v1866_v3, %s2632_s24 }
 0x1fa   : > { %v1869_v54 = vmax.f32 %v1827_v18, 0.0 }
 0x1fb   : > { %v1868_v8 = vmax.f32 %v1822_v41, 0.0  ;;  %v2432_v63 = vpop.f32.mrb[26].mxu1 }
 0x1fc   : > { %v1837_v26 = vadd.f32 %v2432_v63, %v3372_v27  ;;  %v1831_v40 = vpop.f32.mrb[27].mxu1  ;;  %1910 = vrot.lane.b32.xlu1 %v1869_v54, %s2632_s24 }
 0x1fd   : > { %v1832_v44 = vadd.f32 %v3372_v27, %v1831_v40  ;;  %1908 = vrot.lane.b32.xlu0 %v1868_v8, %s2632_s24 }
 0x1fe   : > { %v1871_v11 = vmax.f32 %v1837_v26, 0.0 }
 0x1ff   : > { %v1870_v1 = vmax.f32 %v1832_v44, 0.0  ;;  %v2435_v13 = vpop.f32.mrb[28].mxu1 }
 0x200   : > { %v1847_v14 = vadd.f32 %v2435_v13, %v3372_v27  ;;  %v1841_v60 = vpop.f32.mrb[29].mxu1  ;;  %1914 = vrot.lane.b32.xlu1 %v1871_v11, %s2632_s24 }
 0x201   : > { %v1842_v37 = vadd.f32 %v3372_v27, %v1841_v60  ;;  %1912 = vrot.lane.b32.xlu0 %v1870_v1, %s2632_s24 }
 0x202   : > { %v1873_v19 = vmax.f32 %v1847_v14, 0.0 }
 0x203   : > { %v1872_v59 = vmax.f32 %v1842_v37, 0.0  ;;  %v2438_v21 = vpop.f32.mrb[30].mxu1 }
 0x204   : > { %v1857_v51 = vadd.f32 %v2438_v21, %v3372_v27  ;;  %1918 = vrot.lane.b32.xlu1 %v1873_v19, %s2632_s24  ;;  %v1851_v52 = vpop.f32.mrb[31].mxu1 }
 0x205   : > { %v1852_v22 = vadd.f32 %v3372_v27, %v1851_v52  ;;  %1916 = vrot.lane.b32.xlu0 %v1872_v59, %s2632_s24 }
 0x206   : > { %v1875_v5 = vmax.f32 %v1857_v51, 0.0 }
 0x207   : > { %v1874_v30 = vmax.f32 %v1852_v22, 0.0  ;;  %v1405_v29 = vpop.permute.xlu1 %1404  ;;  %v2336_v33 = vpop.f32.mrb[2].mxu0 }
 0x208   : > { %v1451_v39 = vsel %vm712_vm2, %v949_v4, %v1405_v29  ;;  %1922 = vrot.lane.b32.xlu1 %v1875_v5, %s2632_s24  ;;  %v1403_v35 = vpop.permute.xlu0 %1402  ;;  %v879_v38 = vpop.f32.mrb[3].mxu0  ;;  %v885_v23 = vadd.f32 %v2336_v33, %v3372_v27 }
 0x209   : > { %1467 = vst.msk [vmem:[%s2808_s12 + $0x8] sm:$0xff] %vm754_vm4, %v1451_v39  ;;  %v1450_v42 = vsel %vm712_vm2, %v948_v28, %v1403_v35  ;;  %1920 = vrot.lane.b32.xlu0 %v1874_v30, %s2632_s24  ;;  %v880_v48 = vadd.f32 %v3372_v27, %v879_v38 }
 0x20a   : > { %1466 = vst.msk [vmem:[%s2808_s12] sm:$0xff] %vm754_vm4, %v1450_v42  ;;  %v951_v15 = vmax.f32 %v885_v23, 0.0 }
 0x20b   : > { %v950_v17 = vmax.f32 %v880_v48, 0.0 }
 0x212   : > { %v1409_v55 = vpop.permute.xlu1 %1408 }
 0x213   : > { %v1453_v56 = vsel %vm712_vm2, %v951_v15, %v1409_v55  ;;  %v1407_v53 = vpop.permute.xlu0 %1406  ;;  %v2339_v32 = vpop.f32.mrb[4].mxu0 }
 0x214   : > { %1469 = vst.msk [vmem:[%s2808_s12 + $0x28] sm:$0xff] %vm754_vm4, %v1453_v56  ;;  %v1452_v24 = vsel %vm712_vm2, %v950_v17, %v1407_v53  ;;  %v889_v25 = vpop.f32.mrb[5].mxu0  ;;  %v895_v49 = vadd.f32 %v2339_v32, %v3372_v27 }
 0x215   : > { %1468 = vst.msk [vmem:[%s2808_s12 + $0x20] sm:$0xff] %vm754_vm4, %v1452_v24  ;;  %v890_v50 = vadd.f32 %v3372_v27, %v889_v25 }
 0x216   : > { %v953_v57 = vmax.f32 %v895_v49, 0.0 }
 0x217   : > { %v952_v58 = vmax.f32 %v890_v50, 0.0 }
 0x21e   : > { %v1413_v61 = vpop.permute.xlu1 %1412 }
 0x21f   : > { %v1455_v62 = vsel %vm712_vm2, %v953_v57, %v1413_v61  ;;  %v1411_v6 = vpop.permute.xlu0 %1410  ;;  %v2342_v47 = vpop.f32.mrb[6].mxu0 }
 0x220   : > { %1471 = vst.msk [vmem:[%s2808_s12 + $0x48] sm:$0xff] %vm754_vm4, %v1455_v62  ;;  %v1454_v46 = vsel %vm712_vm2, %v952_v58, %v1411_v6  ;;  %v899_v34 = vpop.f32.mrb[7].mxu0  ;;  %v905_v12 = vadd.f32 %v2342_v47, %v3372_v27 }
 0x221   : > { %1470 = vst.msk [vmem:[%s2808_s12 + $0x40] sm:$0xff] %vm754_vm4, %v1454_v46  ;;  %v900_v43 = vadd.f32 %v3372_v27, %v899_v34 }
 0x222   : > { %v955_v10 = vmax.f32 %v905_v12, 0.0 }
 0x223   : > { %v954_v20 = vmax.f32 %v900_v43, 0.0 }
 0x22a   : > { %v1417_v45 = vpop.permute.xlu1 %1416 }
 0x22b   : > { %v1457_v31 = vsel %vm712_vm2, %v955_v10, %v1417_v45  ;;  %v1415_v2 = vpop.permute.xlu0 %1414  ;;  %v2345_v0 = vpop.f32.mrb[8].mxu0 }
 0x22c   : > { %1473 = vst.msk [vmem:[%s2808_s12 + $0x68] sm:$0xff] %vm754_vm4, %v1457_v31  ;;  %v1456_v3 = vsel %vm712_vm2, %v954_v20, %v1415_v2  ;;  %v909_v36 = vpop.f32.mrb[9].mxu0  ;;  %v915_v18 = vadd.f32 %v2345_v0, %v3372_v27 }
 0x22d   : > { %1472 = vst.msk [vmem:[%s2808_s12 + $0x60] sm:$0xff] %vm754_vm4, %v1456_v3  ;;  %v910_v7 = vadd.f32 %v3372_v27, %v909_v36 }
 0x22e   : > { %v957_v41 = vmax.f32 %v915_v18, 0.0 }
 0x22f   : > { %v956_v54 = vmax.f32 %v910_v7, 0.0 }
 0x236   : > { %v1421_v8 = vpop.permute.xlu1 %1420 }
 0x237   : > { %v1459_v63 = vsel %vm712_vm2, %v957_v41, %v1421_v8  ;;  %v1419_v26 = vpop.permute.xlu0 %1418  ;;  %v2348_v40 = vpop.f32.mrb[10].mxu0 }
 0x238   : > { %1475 = vst.msk [vmem:[%s2808_s12 + $0x88] sm:$0xff] %vm754_vm4, %v1459_v63  ;;  %v1458_v44 = vsel %vm712_vm2, %v956_v54, %v1419_v26  ;;  %v919_v11 = vpop.f32.mrb[11].mxu0  ;;  %v925_v1 = vadd.f32 %v2348_v40, %v3372_v27 }
 0x239   : > { %1474 = vst.msk [vmem:[%s2808_s12 + $0x80] sm:$0xff] %vm754_vm4, %v1458_v44  ;;  %v920_v13 = vadd.f32 %v3372_v27, %v919_v11 }
 0x23a   : > { %v959_v14 = vmax.f32 %v925_v1, 0.0 }
 0x23b   : > { %v958_v60 = vmax.f32 %v920_v13, 0.0 }
 0x242   : > { %v1425_v37 = vpop.permute.xlu1 %1424 }
 0x243   : > { %v1461_v9 = vsel %vm712_vm2, %v959_v14, %v1425_v37  ;;  %v1423_v19 = vpop.permute.xlu0 %1422  ;;  %v2351_v16 = vpop.f32.mrb[12].mxu0 }
 0x244   : > { %1477 = vst.msk [vmem:[%s2808_s12 + $0xa8] sm:$0xff] %vm754_vm4, %v1461_v9  ;;  %v1460_v59 = vsel %vm712_vm2, %v958_v60, %v1423_v19  ;;  %v929_v21 = vpop.f32.mrb[13].mxu0  ;;  %v935_v51 = vadd.f32 %v2351_v16, %v3372_v27 }
 0x245   : > { %1476 = vst.msk [vmem:[%s2808_s12 + $0xa0] sm:$0xff] %vm754_vm4, %v1460_v59  ;;  %v930_v52 = vadd.f32 %v3372_v27, %v929_v21 }
 0x246   : > { %v961_v22 = vmax.f32 %v935_v51, 0.0 }
 0x247   : > { %v960_v4 = vmax.f32 %v930_v52, 0.0 }
 0x24e   : > { %v1429_v5 = vpop.permute.xlu1 %1428 }
 0x24f   : > { %v1463_v28 = vsel %vm712_vm2, %v961_v22, %v1429_v5  ;;  %v1427_v30 = vpop.permute.xlu0 %1426  ;;  %v2354_v29 = vpop.f32.mrb[14].mxu0 }
 0x250   : > { %1479 = vst.msk [vmem:[%s2808_s12 + $0xc8] sm:$0xff] %vm754_vm4, %v1463_v28  ;;  %v1462_v33 = vsel %vm712_vm2, %v960_v4, %v1427_v30  ;;  %v939_v39 = vpop.f32.mrb[15].mxu0  ;;  %v945_v42 = vadd.f32 %v2354_v29, %v3372_v27 }
 0x251   : > { %1478 = vst.msk [vmem:[%s2808_s12 + $0xc0] sm:$0xff] %vm754_vm4, %v1462_v33  ;;  %v940_v23 = vadd.f32 %v3372_v27, %v939_v39 }
 0x252   : > { %v963_v17 = vmax.f32 %v945_v42, 0.0 }
 0x253   : > { %v2389_v35 = vpop.f32.mrb[16].mxu0  ;;  %v962_v56 = vmax.f32 %v940_v23, 0.0 }
 0x254   : > { %v1585_v38 = vpop.f32.mrb[17].mxu0  ;;  %v1591_v55 = vadd.f32 %v2389_v35, %v3372_v27 }
 0x255   : > { %v1586_v53 = vadd.f32 %v3372_v27, %v1585_v38 }
 0x256   : > { %v1665_v58 = vmax.f32 %v1591_v55, 0.0 }
 0x257   : > { %v2392_v48 = vpop.f32.mrb[18].mxu0  ;;  %v1664_v62 = vmax.f32 %v1586_v53, 0.0 }
 0x258   : > { %v1595_v15 = vpop.f32.mrb[19].mxu0  ;;  %v1601_v61 = vadd.f32 %v2392_v48, %v3372_v27 }
 0x259   : > { %v1596_v6 = vadd.f32 %v3372_v27, %v1595_v15 }
 0x25a   : > { %v1433_v32 = vpop.permute.xlu1 %1432  ;;  %v1667_v20 = vmax.f32 %v1601_v61, 0.0 }
 0x25b   : > { %v1465_v24 = vsel %vm712_vm2, %v963_v17, %v1433_v32  ;;  %v1431_v25 = vpop.permute.xlu0 %1430  ;;  %v2395_v49 = vpop.f32.mrb[20].mxu0  ;;  %v1666_v31 = vmax.f32 %v1596_v6, 0.0 }
 0x25c   : > { %1481 = vst.msk [vmem:[%s2808_s12 + $0xe8] sm:$0xff] %vm754_vm4, %v1465_v24  ;;  %v1464_v50 = vsel %vm712_vm2, %v962_v56, %v1431_v25  ;;  %v1605_v57 = vpop.f32.mrb[21].mxu0  ;;  %v1611_v45 = vadd.f32 %v2395_v49, %v3372_v27 }
 0x25d   : > { %1480 = vst.msk [vmem:[%s2808_s12 + $0xe0] sm:$0xff] %vm754_vm4, %v1464_v50  ;;  %v1606_v2 = vadd.f32 %v3372_v27, %v1605_v57 }
 0x25e   : > { %v1895_v47 = vpop.permute.xlu1 %1894  ;;  %v1669_v54 = vmax.f32 %v1611_v45, 0.0 }
 0x25f   : > { %v1941_v46 = vsel %vm712_vm2, %v1665_v58, %v1895_v47  ;;  %v1893_v34 = vpop.permute.xlu0 %1892  ;;  %v2398_v12 = vpop.f32.mrb[22].mxu0  ;;  %v1668_v63 = vmax.f32 %v1606_v2, 0.0 }
 0x260   : > { %2224 = vst.msk [vmem:[%s2808_s12 + $0x18] sm:$0xff] %vm754_vm4, %v1941_v46  ;;  %v1940_v43 = vsel %vm712_vm2, %v1664_v62, %v1893_v34  ;;  %v1615_v10 = vpop.f32.mrb[23].mxu0  ;;  %v1621_v8 = vadd.f32 %v2398_v12, %v3372_v27 }
 0x261   : > { %2223 = vst.msk [vmem:[%s2808_s12 + $0x10] sm:$0xff] %vm754_vm4, %v1940_v43  ;;  %v1616_v26 = vadd.f32 %v3372_v27, %v1615_v10 }
 0x262   : > { %v1899_v0 = vpop.permute.xlu1 %1898  ;;  %v1671_v60 = vmax.f32 %v1621_v8, 0.0 }
 0x263   : > { %v1943_v3 = vsel %vm712_vm2, %v1667_v20, %v1899_v0  ;;  %v1897_v36 = vpop.permute.xlu0 %1896  ;;  %v2401_v18 = vpop.f32.mrb[24].mxu0  ;;  %v1670_v9 = vmax.f32 %v1616_v26, 0.0 }
 0x264   : > { %2226 = vst.msk [vmem:[%s2808_s12 + $0x38] sm:$0xff] %vm754_vm4, %v1943_v3  ;;  %v1942_v7 = vsel %vm712_vm2, %v1666_v31, %v1897_v36  ;;  %v1625_v41 = vpop.f32.mrb[25].mxu0  ;;  %v1631_v37 = vadd.f32 %v2401_v18, %v3372_v27 }
 0x265   : > { %2225 = vst.msk [vmem:[%s2808_s12 + $0x30] sm:$0xff] %vm754_vm4, %v1942_v7  ;;  %v1626_v19 = vadd.f32 %v3372_v27, %v1625_v41 }
 0x266   : > { %v1903_v40 = vpop.permute.xlu1 %1902  ;;  %v1673_v4 = vmax.f32 %v1631_v37, 0.0 }
 0x267   : > { %v1945_v44 = vsel %vm712_vm2, %v1669_v54, %v1903_v40  ;;  %v1901_v11 = vpop.permute.xlu0 %1900  ;;  %v2404_v1 = vpop.f32.mrb[26].mxu0  ;;  %v1672_v28 = vmax.f32 %v1626_v19, 0.0 }
 0x268   : > { %2228 = vst.msk [vmem:[%s2808_s12 + $0x58] sm:$0xff] %vm754_vm4, %v1945_v44  ;;  %v1944_v13 = vsel %vm712_vm2, %v1668_v63, %v1901_v11  ;;  %v1635_v14 = vpop.f32.mrb[27].mxu0  ;;  %v1641_v5 = vadd.f32 %v2404_v1, %v3372_v27 }
 0x269   : > { %2227 = vst.msk [vmem:[%s2808_s12 + $0x50] sm:$0xff] %vm754_vm4, %v1944_v13  ;;  %v1636_v30 = vadd.f32 %v3372_v27, %v1635_v14 }
 0x26a   : > { %v1907_v16 = vpop.permute.xlu1 %1906  ;;  %v1675_v23 = vmax.f32 %v1641_v5, 0.0 }
 0x26b   : > { %v1947_v59 = vsel %vm712_vm2, %v1671_v60, %v1907_v16  ;;  %v1905_v21 = vpop.permute.xlu0 %1904  ;;  %v2407_v51 = vpop.f32.mrb[28].mxu0  ;;  %v1674_v15 = vmax.f32 %v1636_v30, 0.0 }
 0x26c   : > { %2230 = vst.msk [vmem:[%s2808_s12 + $0x78] sm:$0xff] %vm754_vm4, %v1947_v59  ;;  %v1946_v52 = vsel %vm712_vm2, %v1670_v9, %v1905_v21  ;;  %v1645_v22 = vpop.f32.mrb[29].mxu0  ;;  %v1651_v48 = vadd.f32 %v2407_v51, %v3372_v27 }
 0x26d   : > { %2229 = vst.msk [vmem:[%s2808_s12 + $0x70] sm:$0xff] %vm754_vm4, %v1946_v52  ;;  %v1646_v17 = vadd.f32 %v3372_v27, %v1645_v22 }
 0x26e   : > { %v1911_v29 = vpop.permute.xlu1 %1910  ;;  %v1677_v24 = vmax.f32 %v1651_v48, 0.0 }
 0x26f   : > { %v1949_v33 = vsel %vm712_vm2, %v1673_v4, %v1911_v29  ;;  %v1909_v39 = vpop.permute.xlu0 %1908  ;;  %v2410_v35 = vpop.f32.mrb[30].mxu0  ;;  %v1676_v49 = vmax.f32 %v1646_v17, 0.0 }
 0x270   : > { %2232 = vst.msk [vmem:[%s2808_s12 + $0x98] sm:$0xff] %vm754_vm4, %v1949_v33  ;;  %v1948_v38 = vsel %vm712_vm2, %v1672_v28, %v1909_v39  ;;  %v1655_v42 = vpop.f32.mrb[31].mxu0  ;;  %v1661_v25 = vadd.f32 %v2410_v35, %v3372_v27 }
 0x271   : > { %2231 = vst.msk [vmem:[%s2808_s12 + $0x90] sm:$0xff] %vm754_vm4, %v1948_v38  ;;  %v1656_v50 = vadd.f32 %v3372_v27, %v1655_v42 }
 0x272   : > { %v1915_v55 = vpop.permute.xlu1 %1914  ;;  %v1679_v6 = vmax.f32 %v1661_v25, 0.0 }
 0x273   : > { %v1951_v56 = vsel %vm712_vm2, %v1675_v23, %v1915_v55  ;;  %v1913_v53 = vpop.permute.xlu0 %1912  ;;  %v1678_v47 = vmax.f32 %v1656_v50, 0.0 }
 0x274   : > { %2234 = vst.msk [vmem:[%s2808_s12 + $0xb8] sm:$0xff] %vm754_vm4, %v1951_v56  ;;  %v1950_v32 = vsel %vm712_vm2, %v1674_v15, %v1913_v53 }
 0x275   : > { %2233 = vst.msk [vmem:[%s2808_s12 + $0xb0] sm:$0xff] %vm754_vm4, %v1950_v32 }
 0x276   : > { %v1919_v57 = vpop.permute.xlu1 %1918 }
 0x277   : > { %v1953_v58 = vsel %vm712_vm2, %v1677_v24, %v1919_v57  ;;  %v1917_v61 = vpop.permute.xlu0 %1916 }
 0x278   : > { %2236 = vst.msk [vmem:[%s2808_s12 + $0xd8] sm:$0xff] %vm754_vm4, %v1953_v58  ;;  %v1952_v62 = vsel %vm712_vm2, %v1676_v49, %v1917_v61 }
 0x279   : > { %2235 = vst.msk [vmem:[%s2808_s12 + $0xd0] sm:$0xff] %vm754_vm4, %v1952_v62 }
 0x27a   : > { %v1923_v46 = vpop.permute.xlu1 %1922 }
 0x27b   : > { %v1955_v27 = vsel %vm712_vm2, %v1679_v6, %v1923_v46  ;;  %v1921_v34 = vpop.permute.xlu0 %1920 }
 0x27c   : > { %2238 = vst.msk [vmem:[%s2808_s12 + $0xf8] sm:$0xff] %vm754_vm4, %v1955_v27  ;;  %v1954_v12 = vsel %vm712_vm2, %v1678_v47, %v1921_v34 }
 0x27d   : > { %2237 = vst.msk [vmem:[%s2808_s12 + $0xf0] sm:$0xff] %vm754_vm4, %v1954_v12 }
 0x27e   : > { %2546 = shalt.err (!%p2543_p13)
}
 0x27f   : > { %s2547_s12 = scalar_lea.hbm %s3581_s10, 4096  ;;  %s2551_s16 = scalar_lea.hbm %s3651_s5, 16384 }
 0x280   : > { %p2548_p0 = scmp.ne.s32.totalorder %s3581_s10, %s2547_s12  ;;  %p2552_p4 = scmp.lt.u32.totalorder %s3581_s10, %s3651_s5 }
 0x281   : > { %p2553_p5 = scmp.lt.u32.totalorder %s2551_s16, %s2547_s12  ;;  %p2555_p7 = scmp.lt.u32.totalorder %s2547_s12, %s3581_s10 }
 0x282   : > { %p2549_p1 = pnand %p2548_p0, %p2718_p3 }
 0x283   : > { %p2554_p6 = por %p2553_p5, %p2552_p4 }
 0x284   : > { %p2550_p2 = pneg %p2549_p1 }
 0x285   : > { %p2556_p9 = por %p2555_p7, %p2554_p6 }
 0x287   : > { %p2557_p10 = pnand %p2556_p9, %p2550_p2 }
 0x289   : > { %2560 = shalt.err (!%p2557_p10)
}
 0x28a   : > { %s2636_s21 = smov 128  }
 0x28b   : > { %2455 = dma.vmem_to_hbm [thread:$0]  (%p2718_p3), %s3584_s22, 4096, %s3581_s10, %s3593_s29, %s2636_s21, %s2636_s21, %s2632_s24  }
 0x28c PF: > { %p2461_p11 = scmp.ge.s32.totalorder %s2627_s25, 2  ;;  %s2005_s30 = sand.u32 1, %s2599_s18  }
 0x28d   : > { %s2006_s8 = scalar_lea.sflag [#allocation4], %s2005_s30 }
 0x28e   : > { %p2458_p12 = pnand %p2461_p11, %p2727_p8 }
 0x290   : > { %2594 = dma.done.wait (!%p2458_p12), %s2006_s8, 4096  }
 0x291   : > { %2596 = vsyncadd (!%p2458_p12), %s2006_s8, 4294963200  ;;  %s18_s25 = sadd.s32 1, %s2627_s25   ;;  %s3665_s22 = sld [smem:[#allocation6_spill]] }
 0x292   : > { %p15_p13 = scmp.ge.s32.totalorder %s18_s25, 6   ;;  %s3666_s6 = sld [smem:[#allocation7_spill]] }
 0x293   : > { %s3667_s24 = sld [smem:[#allocation8_spill]]  ;;  %s3668_s18 = smov %s2603_s19 }
 0x294   : > { %s3669_s19 = smov %s2607_s20  ;;  %s3670_s20 = smov %s2736_s11 }
 0x295   : > { %s3671_s21 = smov %s2619_s23  ;;  %17 = sbr.rel (!%p15_p13) target bundleno = 7 (0x7), region = 95 }
 0x298   : > { %s3672_s23 = smov %s3666_s6 }
 0x29c   :  { %2011 = vsyncpa [#allocation4], 1 }
 0x29d   :  { %2013 = vsyncpa [#allocation4 + $0x1], 1 }

</bundles_post_ra>
